<compile_context>
chip_gen: v6e
topology: v6e:2x2x1
jax: 0.10.0
libtpu: 0.0.40
codegen_flags: <defaults>
</compile_context>

<pallas_src>
import jax
import jax.numpy as jnp
from jax import lax
from jax.experimental import pallas as pl
from jax.experimental.pallas import tpu as pltpu


def pool_unit_kernel(x_ref, w1_ref, b1_ref, wd_ref, bd_ref, w2_ref, b2_ref,
                     taps_ref, pool_ref, out_ref):
    nb, cin, hw = x_ref.shape
    neck = w1_ref.shape[0]
    cmid = w2_ref.shape[0]
    hwo = pool_ref.shape[1]

    w1 = w1_ref[...]            # (neck, Cin)   BN1 scale + channel shuffle folded in
    b1 = b1_ref[...]            # (neck, 1)
    wd = wd_ref[...]            # (neck, 9)     BNd scale folded in
    bd = bd_ref[...]            # (neck, 1)
    w2 = w2_ref[...]            # (Cmid, neck)  BN2 scale folded in
    b2 = b2_ref[...]            # (Cmid, 1)

    # ---- gconv1 + bn1 + relu, per batch element (K = Cin = 8: negligible) ----
    y1s = []
    xs = []
    for b in range(nb):                       # small static unroll (nb <= 8)
        xb = x_ref[b]                         # (Cin, HW), spatial on lanes
        y1 = jnp.dot(w1, xb, preferred_element_type=jnp.float32)
        y1s.append(jnp.maximum(y1 + b1, 0.0))  # (neck, HW)
        xs.append(xb)

    # ---- depthwise 3x3 / stride-2 / pad-1: ONE fused MXU matmul --------------
    # For each of the 9 taps, scale y1 by the (BN-folded) depthwise weight
    # column, stack the batch block on the sublane (M) axis (f32, 8-row
    # granular), cast to bf16, then lane-concat the 9 taps (256-lane granular).
    tap_lhs = jnp.concatenate(
        [jnp.concatenate([y1s[b] * wd[:, t:t + 1] for b in range(nb)],
                         axis=0).astype(jnp.bfloat16)
         for t in range(9)], axis=1)                       # (nb*neck, 9*HW) bf16
    yd_all = jnp.dot(tap_lhs, taps_ref[...],
                     preferred_element_type=jnp.float32)   # (nb*neck, HWo) f32

    # ---- shortcut: 2x2 / stride-2 avg pool, batch stacked on M ---------------
    x_all = jnp.concatenate(xs, axis=0).astype(jnp.bfloat16)   # (nb*Cin, HW)
    sc_all = jnp.dot(x_all, pool_ref[...],
                     preferred_element_type=jnp.float32)       # (nb*Cin, HWo)

    # ---- gconv2 + bn2 + relu, direct lane-sliced stores (no concat/stack) ----
    for b in range(nb):
        yd = yd_all[b * neck:(b + 1) * neck, :] + bd            # (neck, HWo)
        y2 = jnp.dot(w2, yd, preferred_element_type=jnp.float32) + b2
        lo = b * hwo
        out_ref[:cmid, lo:lo + hwo] = jnp.maximum(y2, 0.0)
        out_ref[cmid:cmid + cin, lo:lo + hwo] = jnp.maximum(
            sc_all[b * cin:(b + 1) * cin, :], 0.0)


def pool_unit_forward(x_nchw, w1_folded, b1, wd_folded, bd, w2_folded, b2,
                      taps_stacked, pool_mat, *, batch_block=4):
    N, Cin, H, W = x_nchw.shape
    neck = w1_folded.shape[0]
    Cmid = w2_folded.shape[0]
    Cout = Cmid + Cin
    Ho, Wo = H // 2, W // 2
    HW, HWo = H * W, Ho * Wo

    nb = batch_block
    assert N % nb == 0, "batch must be divisible by batch_block"
    assert (nb * HWo) % 128 == 0, "pick batch_block so the output is lane-dense"

    # Free reshape (NCHW is contiguous): spatial goes onto the lane axis.
    x = x_nchw.reshape(N, Cin, HW).astype(jnp.float32)

    grid_spec = pltpu.PrefetchScalarGridSpec(
        num_scalar_prefetch=0,
        grid=(N // nb,),
        in_specs=[
            pl.BlockSpec((nb, Cin, HW), lambda n: (n, 0, 0)),
            pl.BlockSpec((neck, Cin), lambda n: (0, 0)),
            pl.BlockSpec((neck, 1), lambda n: (0, 0)),
            pl.BlockSpec((neck, 9), lambda n: (0, 0)),
            pl.BlockSpec((neck, 1), lambda n: (0, 0)),
            pl.BlockSpec((Cmid, neck), lambda n: (0, 0)),
            pl.BlockSpec((Cmid, 1), lambda n: (0, 0)),
            pl.BlockSpec((9 * HW, HWo), lambda n: (0, 0)),
            pl.BlockSpec((HW, HWo), lambda n: (0, 0)),
        ],
        # Lane-dense output slab: batch block folded onto the lane axis.
        out_specs=pl.BlockSpec((None, Cout, nb * HWo), lambda n: (n, 0, 0)),
    )

    out = pl.pallas_call(
        pool_unit_kernel,
        out_shape=jax.ShapeDtypeStruct((N // nb, Cout, nb * HWo), jnp.float32),
        grid_spec=grid_spec,
        compiler_params=pltpu.CompilerParams(
            dimension_semantics=("parallel",)),
    )(x, w1_folded, b1, wd_folded, bd, w2_folded, b2, taps_stacked, pool_mat)

    # Layout plumbing only: unfold the batch block back off the lane axis.
    out = out.reshape(N // nb, Cout, nb, HWo).transpose(0, 2, 1, 3)
    return out.reshape(N, Cout, Ho, Wo)


# --------------------------- pure-JAX reference ------------------------------
def reference_pool_unit(x, w1, bn1, wd, bnd, w2, bn2, g):
    eps = 1e-5

    def bn(t, p):
        gamma, beta, mean, var = p
        inv = gamma / jnp.sqrt(var + eps)
        return (t - mean[None, :, None, None]) * inv[None, :, None, None] \
            + beta[None, :, None, None]

    dn = ('NCHW', 'OIHW', 'NCHW')
    y = lax.conv_general_dilated(x, w1[:, :, None, None], (1, 1), 'VALID',
                                 feature_group_count=g, dimension_numbers=dn)
    y = jax.nn.relu(bn(y, bn1))
    N, C, H, W = y.shape
    n_ = C // g
    y = y.reshape(N, g, n_, H, W).transpose(0, 2, 1, 3, 4).reshape(N, C, H, W)
    y = lax.conv_general_dilated(y, wd[:, None, :, :], (2, 2), [(1, 1), (1, 1)],
                                 feature_group_count=C, dimension_numbers=dn)
    y = bn(y, bnd)
    y = lax.conv_general_dilated(y, w2[:, :, None, None], (1, 1), 'VALID',
                                 feature_group_count=g, dimension_numbers=dn)
    y = bn(y, bn2)
    Nn, Ci, Hh, Ww = x.shape
    sc = x.reshape(Nn, Ci, Hh // 2, 2, Ww // 2, 2).mean(axis=(3, 5))
    return jax.nn.relu(jnp.concatenate([y, sc], axis=1))


# ------------------------ parameter folding helpers ---------------------------
def fold_bn(p, eps=1e-5):
    gamma, beta, mean, var = p
    scale = gamma / jnp.sqrt(var + eps)
    return scale, beta - mean * scale


def grouped_dense(w, groups):
    """(c_out, c_in_per_group) grouped 1x1 weight -> dense (c_out, c_in)."""
    c_out, c_in_g = w.shape
    c_out_g = c_out // groups
    c_in = c_in_g * groups
    dense = jnp.zeros((c_out, c_in), jnp.float32)
    for gi in range(groups):
        dense = dense.at[gi * c_out_g:(gi + 1) * c_out_g,
                         gi * c_in_g:(gi + 1) * c_in_g].set(
            w[gi * c_out_g:(gi + 1) * c_out_g, :])
    return dense


def build_dw_tap_mats(H, W, Ho, Wo):
    """9 selection matrices (HW, HoWo): tap t=kh*3+kw picks pixel (2i+kh-1, 2j+kw-1)."""
    q = jnp.arange(Ho * Wo)
    i, j = q // Wo, q % Wo
    mats = []
    for kh in range(3):
        for kw in range(3):
            r = 2 * i + kh - 1
            c = 2 * j + kw - 1
            valid = (r >= 0) & (r < H) & (c >= 0) & (c < W)
            p = jnp.clip(r, 0, H - 1) * W + jnp.clip(c, 0, W - 1)
            m = jnp.zeros((H * W, Ho * Wo), jnp.float32)
            m = m.at[p, q].set(valid.astype(jnp.float32))
            mats.append(m)
    return jnp.stack(mats, axis=0)


def build_pool_mat(H, W, Ho, Wo):
    """(HW, HoWo) matrix implementing 2x2/stride-2 average pooling (0.25 folded in)."""
    q = jnp.arange(Ho * Wo)
    i, j = q // Wo, q % Wo
    m = jnp.zeros((H * W, Ho * Wo), jnp.float32)
    for a in range(2):
        for b in range(2):
            p = (2 * i + a) * W + (2 * j + b)
            m = m.at[p, q].set(0.25)
    return m


if __name__ == "__main__":
    N, Cin, Cout, g = 8, 8, 32, 2
    H = W = 16
    neck = Cout // 4            # 8
    Cmid = Cout - Cin           # 24
    n_sh = neck // g            # 4
    assert neck % g == 0 and Cin % g == 0 and Cmid % g == 0

    key = jax.random.PRNGKey(0)
    kx, k1, k2, k3, kb1, kb2, kb3 = jax.random.split(key, 7)

    x_nchw = jax.random.normal(kx, (N, Cin, H, W), jnp.float32)

    # conv weights (kernel-size-1 dims squeezed for the 1x1 convs)
    w1 = 0.25 * jax.random.normal(k1, (neck, Cin // g), jnp.float32)    # gconv1
    wd = 0.25 * jax.random.normal(k2, (neck, 3, 3), jnp.float32)        # dwconv
    w2 = 0.25 * jax.random.normal(k3, (Cmid, neck // g), jnp.float32)   # gconv2

    def bn_init(k, C):
        ka, kb, kc, kd = jax.random.split(k, 4)
        gamma = 1.0 + 0.1 * jax.random.normal(ka, (C,), jnp.float32)
        beta = 0.1 * jax.random.normal(kb, (C,), jnp.float32)
        mean = 0.1 * jax.random.normal(kc, (C,), jnp.float32)
        var = 0.8 + 0.4 * jax.random.uniform(kd, (C,), jnp.float32)
        return gamma, beta, mean, var

    bn1 = bn_init(kb1, neck)
    bnd = bn_init(kb2, neck)
    bn2 = bn_init(kb3, Cmid)

    # --- fold params into kernel-friendly form --------------------------------
    s1, bb1 = fold_bn(bn1)
    sd, bbd = fold_bn(bnd)
    s2, bb2 = fold_bn(bn2)

    # channel-shuffle permutation folded into gconv1 rows; BN scales folded
    # directly into the conv weights (scale * (W @ x) == (scale*W) @ x).
    perm = jnp.arange(neck).reshape(g, n_sh).T.reshape(-1)
    w1_folded = (grouped_dense(w1, g) * s1[:, None])[perm, :]      # (neck, Cin)
    b1_folded = bb1[perm].reshape(neck, 1)
    wd_folded = wd.reshape(neck, 9) * sd[:, None]                  # (neck, 9)
    bd_folded = bbd.reshape(neck, 1)
    w2_folded = grouped_dense(w2, g) * s2[:, None]                 # (Cmid, neck)
    b2_folded = bb2.reshape(Cmid, 1)

    # 0/1 tap-selection matrices stacked along the contraction axis, and the
    # 2x2 avg-pool matrix (0.25 folded in).  Both are exact in bf16.
    Ho, Wo = H // 2, W // 2
    taps_stacked = build_dw_tap_mats(H, W, Ho, Wo) \
        .reshape(9 * H * W, Ho * Wo).astype(jnp.bfloat16)          # (9*HW, HWo)
    pool_mat = build_pool_mat(H, W, Ho, Wo).astype(jnp.bfloat16)   # (HW, HWo)

    out = pool_unit_forward(
        x_nchw, w1_folded, b1_folded, wd_folded, bd_folded,
        w2_folded, b2_folded, taps_stacked, pool_mat, batch_block=4)
    out = jax.block_until_ready(out)

    ref = jax.block_until_ready(
        reference_pool_unit(x_nchw, w1, bn1, wd, bnd, w2, bn2, g))

    assert out.shape == (N, Cout, Ho, Wo), out.shape
    # bf16 LHS on the tap/pool matmuls gives ~1e-3 relative error vs f32 ref.
    if not jnp.allclose(out, ref, atol=2e-2, rtol=2e-2):
        max_err = float(jnp.max(jnp.abs(out - ref)))
        raise AssertionError(f"Pallas result mismatch, max abs err = {max_err}")
    print("KERNEL_OK")
</pallas_src>

<mosaic_0001>
module attributes {stable_mosaic.version = 11 : i64} {
  func.func @pool_unit_kernel(%arg0: i32, %arg1: memref<4x8x256xf32, #tpu.memory_space<vmem>>, %arg2: memref<8x8xf32, #tpu.memory_space<vmem>>, %arg3: memref<8x1xf32, #tpu.memory_space<vmem>>, %arg4: memref<8x9xf32, #tpu.memory_space<vmem>>, %arg5: memref<8x1xf32, #tpu.memory_space<vmem>>, %arg6: memref<24x8xf32, #tpu.memory_space<vmem>>, %arg7: memref<24x1xf32, #tpu.memory_space<vmem>>, %arg8: memref<2304x64xbf16, #tpu.memory_space<vmem>>, %arg9: memref<256x64xbf16, #tpu.memory_space<vmem>>, %arg10: memref<1x32x256xf32, #tpu.memory_space<vmem>>) attributes {dimension_semantics = [#tpu.dimension_semantics<parallel>], iteration_bounds = array<i64: 2>, scalar_prefetch = 0 : i64, scratch_operands = 0 : i64, tpu.core_type = #tpu.core_type<tc>, window_params = [{transform_indices = @transform_0, window_bounds = array<i64: 4, 8, 256>}, {pipeline_mode = #tpu.pipeline_mode<synchronous>, transform_indices = @transform_1, window_bounds = array<i64: 8, 8>}, {pipeline_mode = #tpu.pipeline_mode<synchronous>, transform_indices = @transform_2, window_bounds = array<i64: 8, 1>}, {pipeline_mode = #tpu.pipeline_mode<synchronous>, transform_indices = @transform_3, window_bounds = array<i64: 8, 9>}, {pipeline_mode = #tpu.pipeline_mode<synchronous>, transform_indices = @transform_4, window_bounds = array<i64: 8, 1>}, {pipeline_mode = #tpu.pipeline_mode<synchronous>, transform_indices = @transform_5, window_bounds = array<i64: 24, 8>}, {pipeline_mode = #tpu.pipeline_mode<synchronous>, transform_indices = @transform_6, window_bounds = array<i64: 24, 1>}, {pipeline_mode = #tpu.pipeline_mode<synchronous>, transform_indices = @transform_7, window_bounds = array<i64: 2304, 64>}, {pipeline_mode = #tpu.pipeline_mode<synchronous>, transform_indices = @transform_8, window_bounds = array<i64: 256, 64>}, {transform_indices = @transform_9, window_bounds = array<i64: 1, 32, 256>}]} {
    %c0 = arith.constant 0 : index
    %c0_0 = arith.constant 0 : index
    %0 = vector.load %arg2[%c0, %c0_0] : memref<8x8xf32, #tpu.memory_space<vmem>>, vector<8x8xf32>
    %c0_1 = arith.constant 0 : index
    %c0_2 = arith.constant 0 : index
    %1 = vector.load %arg3[%c0_1, %c0_2] : memref<8x1xf32, #tpu.memory_space<vmem>>, vector<8x1xf32>
    %c0_3 = arith.constant 0 : index
    %c0_4 = arith.constant 0 : index
    %2 = vector.load %arg4[%c0_3, %c0_4] : memref<8x9xf32, #tpu.memory_space<vmem>>, vector<8x9xf32>
    %c0_5 = arith.constant 0 : index
    %c0_6 = arith.constant 0 : index
    %3 = vector.load %arg5[%c0_5, %c0_6] : memref<8x1xf32, #tpu.memory_space<vmem>>, vector<8x1xf32>
    %c0_7 = arith.constant 0 : index
    %c0_8 = arith.constant 0 : index
    %4 = vector.load %arg6[%c0_7, %c0_8] : memref<24x8xf32, #tpu.memory_space<vmem>>, vector<24x8xf32>
    %c0_9 = arith.constant 0 : index
    %c0_10 = arith.constant 0 : index
    %5 = vector.load %arg7[%c0_9, %c0_10] : memref<24x1xf32, #tpu.memory_space<vmem>>, vector<24x1xf32>
    %c0_11 = arith.constant 0 : index
    %c0_12 = arith.constant 0 : index
    %c0_13 = arith.constant 0 : index
    %6 = vector.load %arg1[%c0_11, %c0_12, %c0_13] : memref<4x8x256xf32, #tpu.memory_space<vmem>>, vector<1x8x256xf32>
    %7 = vector.shape_cast %6 : vector<1x8x256xf32> to vector<8x256xf32>
    %cst = arith.constant dense<0.000000e+00> : vector<8x256xf32>
    %8 = tpu.matmul %0, %7, %cst {dimension_numbers = #tpu.dot_dimension_numbers<[1], [0], [0], [1], [0, 0, 1, 1], [], []>} : vector<8x8xf32>, vector<8x256xf32>, vector<8x256xf32> -> vector<8x256xf32>
    %9 = vector.broadcast %1 : vector<8x1xf32> to vector<8x256xf32>
    %10 = arith.addf %8, %9 : vector<8x256xf32>
    %cst_14 = arith.constant 0.000000e+00 : f32
    %11 = vector.broadcast %cst_14 : f32 to vector<8x256xf32>
    %12 = arith.maximumf %10, %11 : vector<8x256xf32>
    %c1 = arith.constant 1 : index
    %c0_15 = arith.constant 0 : index
    %c0_16 = arith.constant 0 : index
    %13 = vector.load %arg1[%c1, %c0_15, %c0_16] : memref<4x8x256xf32, #tpu.memory_space<vmem>>, vector<1x8x256xf32>
    %14 = vector.shape_cast %13 : vector<1x8x256xf32> to vector<8x256xf32>
    %cst_17 = arith.constant dense<0.000000e+00> : vector<8x256xf32>
    %15 = tpu.matmul %0, %14, %cst_17 {dimension_numbers = #tpu.dot_dimension_numbers<[1], [0], [0], [1], [0, 0, 1, 1], [], []>} : vector<8x8xf32>, vector<8x256xf32>, vector<8x256xf32> -> vector<8x256xf32>
    %16 = vector.broadcast %1 : vector<8x1xf32> to vector<8x256xf32>
    %17 = arith.addf %15, %16 : vector<8x256xf32>
    %cst_18 = arith.constant 0.000000e+00 : f32
    %18 = vector.broadcast %cst_18 : f32 to vector<8x256xf32>
    %19 = arith.maximumf %17, %18 : vector<8x256xf32>
    %c2 = arith.constant 2 : index
    %c0_19 = arith.constant 0 : index
    %c0_20 = arith.constant 0 : index
    %20 = vector.load %arg1[%c2, %c0_19, %c0_20] : memref<4x8x256xf32, #tpu.memory_space<vmem>>, vector<1x8x256xf32>
    %21 = vector.shape_cast %20 : vector<1x8x256xf32> to vector<8x256xf32>
    %cst_21 = arith.constant dense<0.000000e+00> : vector<8x256xf32>
    %22 = tpu.matmul %0, %21, %cst_21 {dimension_numbers = #tpu.dot_dimension_numbers<[1], [0], [0], [1], [0, 0, 1, 1], [], []>} : vector<8x8xf32>, vector<8x256xf32>, vector<8x256xf32> -> vector<8x256xf32>
    %23 = vector.broadcast %1 : vector<8x1xf32> to vector<8x256xf32>
    %24 = arith.addf %22, %23 : vector<8x256xf32>
    %cst_22 = arith.constant 0.000000e+00 : f32
    %25 = vector.broadcast %cst_22 : f32 to vector<8x256xf32>
    %26 = arith.maximumf %24, %25 : vector<8x256xf32>
    %c3 = arith.constant 3 : index
    %c0_23 = arith.constant 0 : index
    %c0_24 = arith.constant 0 : index
    %27 = vector.load %arg1[%c3, %c0_23, %c0_24] : memref<4x8x256xf32, #tpu.memory_space<vmem>>, vector<1x8x256xf32>
    %28 = vector.shape_cast %27 : vector<1x8x256xf32> to vector<8x256xf32>
    %cst_25 = arith.constant dense<0.000000e+00> : vector<8x256xf32>
    %29 = tpu.matmul %0, %28, %cst_25 {dimension_numbers = #tpu.dot_dimension_numbers<[1], [0], [0], [1], [0, 0, 1, 1], [], []>} : vector<8x8xf32>, vector<8x256xf32>, vector<8x256xf32> -> vector<8x256xf32>
    %30 = vector.broadcast %1 : vector<8x1xf32> to vector<8x256xf32>
    %31 = arith.addf %29, %30 : vector<8x256xf32>
    %cst_26 = arith.constant 0.000000e+00 : f32
    %32 = vector.broadcast %cst_26 : f32 to vector<8x256xf32>
    %33 = arith.maximumf %31, %32 : vector<8x256xf32>
    %34 = vector.extract_strided_slice %2 {offsets = [0, 0], sizes = [8, 1], strides = [1, 1]} : vector<8x9xf32> to vector<8x1xf32>
    %35 = vector.broadcast %34 : vector<8x1xf32> to vector<8x256xf32>
    %36 = arith.mulf %12, %35 : vector<8x256xf32>
    %37 = vector.extract_strided_slice %2 {offsets = [0, 0], sizes = [8, 1], strides = [1, 1]} : vector<8x9xf32> to vector<8x1xf32>
    %38 = vector.broadcast %37 : vector<8x1xf32> to vector<8x256xf32>
    %39 = arith.mulf %19, %38 : vector<8x256xf32>
    %40 = vector.extract_strided_slice %2 {offsets = [0, 0], sizes = [8, 1], strides = [1, 1]} : vector<8x9xf32> to vector<8x1xf32>
    %41 = vector.broadcast %40 : vector<8x1xf32> to vector<8x256xf32>
    %42 = arith.mulf %26, %41 : vector<8x256xf32>
    %43 = vector.extract_strided_slice %2 {offsets = [0, 0], sizes = [8, 1], strides = [1, 1]} : vector<8x9xf32> to vector<8x1xf32>
    %44 = vector.broadcast %43 : vector<8x1xf32> to vector<8x256xf32>
    %45 = arith.mulf %33, %44 : vector<8x256xf32>
    %46 = tpu.concatenate %36, %39, %42, %45 in 0 : vector<8x256xf32>, vector<8x256xf32>, vector<8x256xf32>, vector<8x256xf32> -> vector<32x256xf32>
    %47 = arith.truncf %46 : vector<32x256xf32> to vector<32x256xbf16>
    %48 = vector.extract_strided_slice %2 {offsets = [0, 1], sizes = [8, 1], strides = [1, 1]} : vector<8x9xf32> to vector<8x1xf32>
    %49 = vector.broadcast %48 : vector<8x1xf32> to vector<8x256xf32>
    %50 = arith.mulf %12, %49 : vector<8x256xf32>
    %51 = vector.extract_strided_slice %2 {offsets = [0, 1], sizes = [8, 1], strides = [1, 1]} : vector<8x9xf32> to vector<8x1xf32>
    %52 = vector.broadcast %51 : vector<8x1xf32> to vector<8x256xf32>
    %53 = arith.mulf %19, %52 : vector<8x256xf32>
    %54 = vector.extract_strided_slice %2 {offsets = [0, 1], sizes = [8, 1], strides = [1, 1]} : vector<8x9xf32> to vector<8x1xf32>
    %55 = vector.broadcast %54 : vector<8x1xf32> to vector<8x256xf32>
    %56 = arith.mulf %26, %55 : vector<8x256xf32>
    %57 = vector.extract_strided_slice %2 {offsets = [0, 1], sizes = [8, 1], strides = [1, 1]} : vector<8x9xf32> to vector<8x1xf32>
    %58 = vector.broadcast %57 : vector<8x1xf32> to vector<8x256xf32>
    %59 = arith.mulf %33, %58 : vector<8x256xf32>
    %60 = tpu.concatenate %50, %53, %56, %59 in 0 : vector<8x256xf32>, vector<8x256xf32>, vector<8x256xf32>, vector<8x256xf32> -> vector<32x256xf32>
    %61 = arith.truncf %60 : vector<32x256xf32> to vector<32x256xbf16>
    %62 = vector.extract_strided_slice %2 {offsets = [0, 2], sizes = [8, 1], strides = [1, 1]} : vector<8x9xf32> to vector<8x1xf32>
    %63 = vector.broadcast %62 : vector<8x1xf32> to vector<8x256xf32>
    %64 = arith.mulf %12, %63 : vector<8x256xf32>
    %65 = vector.extract_strided_slice %2 {offsets = [0, 2], sizes = [8, 1], strides = [1, 1]} : vector<8x9xf32> to vector<8x1xf32>
    %66 = vector.broadcast %65 : vector<8x1xf32> to vector<8x256xf32>
    %67 = arith.mulf %19, %66 : vector<8x256xf32>
    %68 = vector.extract_strided_slice %2 {offsets = [0, 2], sizes = [8, 1], strides = [1, 1]} : vector<8x9xf32> to vector<8x1xf32>
    %69 = vector.broadcast %68 : vector<8x1xf32> to vector<8x256xf32>
    %70 = arith.mulf %26, %69 : vector<8x256xf32>
    %71 = vector.extract_strided_slice %2 {offsets = [0, 2], sizes = [8, 1], strides = [1, 1]} : vector<8x9xf32> to vector<8x1xf32>
    %72 = vector.broadcast %71 : vector<8x1xf32> to vector<8x256xf32>
    %73 = arith.mulf %33, %72 : vector<8x256xf32>
    %74 = tpu.concatenate %64, %67, %70, %73 in 0 : vector<8x256xf32>, vector<8x256xf32>, vector<8x256xf32>, vector<8x256xf32> -> vector<32x256xf32>
    %75 = arith.truncf %74 : vector<32x256xf32> to vector<32x256xbf16>
    %76 = vector.extract_strided_slice %2 {offsets = [0, 3], sizes = [8, 1], strides = [1, 1]} : vector<8x9xf32> to vector<8x1xf32>
    %77 = vector.broadcast %76 : vector<8x1xf32> to vector<8x256xf32>
    %78 = arith.mulf %12, %77 : vector<8x256xf32>
    %79 = vector.extract_strided_slice %2 {offsets = [0, 3], sizes = [8, 1], strides = [1, 1]} : vector<8x9xf32> to vector<8x1xf32>
    %80 = vector.broadcast %79 : vector<8x1xf32> to vector<8x256xf32>
    %81 = arith.mulf %19, %80 : vector<8x256xf32>
    %82 = vector.extract_strided_slice %2 {offsets = [0, 3], sizes = [8, 1], strides = [1, 1]} : vector<8x9xf32> to vector<8x1xf32>
    %83 = vector.broadcast %82 : vector<8x1xf32> to vector<8x256xf32>
    %84 = arith.mulf %26, %83 : vector<8x256xf32>
    %85 = vector.extract_strided_slice %2 {offsets = [0, 3], sizes = [8, 1], strides = [1, 1]} : vector<8x9xf32> to vector<8x1xf32>
    %86 = vector.broadcast %85 : vector<8x1xf32> to vector<8x256xf32>
    %87 = arith.mulf %33, %86 : vector<8x256xf32>
    %88 = tpu.concatenate %78, %81, %84, %87 in 0 : vector<8x256xf32>, vector<8x256xf32>, vector<8x256xf32>, vector<8x256xf32> -> vector<32x256xf32>
    %89 = arith.truncf %88 : vector<32x256xf32> to vector<32x256xbf16>
    %90 = vector.extract_strided_slice %2 {offsets = [0, 4], sizes = [8, 1], strides = [1, 1]} : vector<8x9xf32> to vector<8x1xf32>
    %91 = vector.broadcast %90 : vector<8x1xf32> to vector<8x256xf32>
    %92 = arith.mulf %12, %91 : vector<8x256xf32>
    %93 = vector.extract_strided_slice %2 {offsets = [0, 4], sizes = [8, 1], strides = [1, 1]} : vector<8x9xf32> to vector<8x1xf32>
    %94 = vector.broadcast %93 : vector<8x1xf32> to vector<8x256xf32>
    %95 = arith.mulf %19, %94 : vector<8x256xf32>
    %96 = vector.extract_strided_slice %2 {offsets = [0, 4], sizes = [8, 1], strides = [1, 1]} : vector<8x9xf32> to vector<8x1xf32>
    %97 = vector.broadcast %96 : vector<8x1xf32> to vector<8x256xf32>
    %98 = arith.mulf %26, %97 : vector<8x256xf32>
    %99 = vector.extract_strided_slice %2 {offsets = [0, 4], sizes = [8, 1], strides = [1, 1]} : vector<8x9xf32> to vector<8x1xf32>
    %100 = vector.broadcast %99 : vector<8x1xf32> to vector<8x256xf32>
    %101 = arith.mulf %33, %100 : vector<8x256xf32>
    %102 = tpu.concatenate %92, %95, %98, %101 in 0 : vector<8x256xf32>, vector<8x256xf32>, vector<8x256xf32>, vector<8x256xf32> -> vector<32x256xf32>
    %103 = arith.truncf %102 : vector<32x256xf32> to vector<32x256xbf16>
    %104 = vector.extract_strided_slice %2 {offsets = [0, 5], sizes = [8, 1], strides = [1, 1]} : vector<8x9xf32> to vector<8x1xf32>
    %105 = vector.broadcast %104 : vector<8x1xf32> to vector<8x256xf32>
    %106 = arith.mulf %12, %105 : vector<8x256xf32>
    %107 = vector.extract_strided_slice %2 {offsets = [0, 5], sizes = [8, 1], strides = [1, 1]} : vector<8x9xf32> to vector<8x1xf32>
    %108 = vector.broadcast %107 : vector<8x1xf32> to vector<8x256xf32>
    %109 = arith.mulf %19, %108 : vector<8x256xf32>
    %110 = vector.extract_strided_slice %2 {offsets = [0, 5], sizes = [8, 1], strides = [1, 1]} : vector<8x9xf32> to vector<8x1xf32>
    %111 = vector.broadcast %110 : vector<8x1xf32> to vector<8x256xf32>
    %112 = arith.mulf %26, %111 : vector<8x256xf32>
    %113 = vector.extract_strided_slice %2 {offsets = [0, 5], sizes = [8, 1], strides = [1, 1]} : vector<8x9xf32> to vector<8x1xf32>
    %114 = vector.broadcast %113 : vector<8x1xf32> to vector<8x256xf32>
    %115 = arith.mulf %33, %114 : vector<8x256xf32>
    %116 = tpu.concatenate %106, %109, %112, %115 in 0 : vector<8x256xf32>, vector<8x256xf32>, vector<8x256xf32>, vector<8x256xf32> -> vector<32x256xf32>
    %117 = arith.truncf %116 : vector<32x256xf32> to vector<32x256xbf16>
    %118 = vector.extract_strided_slice %2 {offsets = [0, 6], sizes = [8, 1], strides = [1, 1]} : vector<8x9xf32> to vector<8x1xf32>
    %119 = vector.broadcast %118 : vector<8x1xf32> to vector<8x256xf32>
    %120 = arith.mulf %12, %119 : vector<8x256xf32>
    %121 = vector.extract_strided_slice %2 {offsets = [0, 6], sizes = [8, 1], strides = [1, 1]} : vector<8x9xf32> to vector<8x1xf32>
    %122 = vector.broadcast %121 : vector<8x1xf32> to vector<8x256xf32>
    %123 = arith.mulf %19, %122 : vector<8x256xf32>
    %124 = vector.extract_strided_slice %2 {offsets = [0, 6], sizes = [8, 1], strides = [1, 1]} : vector<8x9xf32> to vector<8x1xf32>
    %125 = vector.broadcast %124 : vector<8x1xf32> to vector<8x256xf32>
    %126 = arith.mulf %26, %125 : vector<8x256xf32>
    %127 = vector.extract_strided_slice %2 {offsets = [0, 6], sizes = [8, 1], strides = [1, 1]} : vector<8x9xf32> to vector<8x1xf32>
    %128 = vector.broadcast %127 : vector<8x1xf32> to vector<8x256xf32>
    %129 = arith.mulf %33, %128 : vector<8x256xf32>
    %130 = tpu.concatenate %120, %123, %126, %129 in 0 : vector<8x256xf32>, vector<8x256xf32>, vector<8x256xf32>, vector<8x256xf32> -> vector<32x256xf32>
    %131 = arith.truncf %130 : vector<32x256xf32> to vector<32x256xbf16>
    %132 = vector.extract_strided_slice %2 {offsets = [0, 7], sizes = [8, 1], strides = [1, 1]} : vector<8x9xf32> to vector<8x1xf32>
    %133 = vector.broadcast %132 : vector<8x1xf32> to vector<8x256xf32>
    %134 = arith.mulf %12, %133 : vector<8x256xf32>
    %135 = vector.extract_strided_slice %2 {offsets = [0, 7], sizes = [8, 1], strides = [1, 1]} : vector<8x9xf32> to vector<8x1xf32>
    %136 = vector.broadcast %135 : vector<8x1xf32> to vector<8x256xf32>
    %137 = arith.mulf %19, %136 : vector<8x256xf32>
    %138 = vector.extract_strided_slice %2 {offsets = [0, 7], sizes = [8, 1], strides = [1, 1]} : vector<8x9xf32> to vector<8x1xf32>
    %139 = vector.broadcast %138 : vector<8x1xf32> to vector<8x256xf32>
    %140 = arith.mulf %26, %139 : vector<8x256xf32>
    %141 = vector.extract_strided_slice %2 {offsets = [0, 7], sizes = [8, 1], strides = [1, 1]} : vector<8x9xf32> to vector<8x1xf32>
    %142 = vector.broadcast %141 : vector<8x1xf32> to vector<8x256xf32>
    %143 = arith.mulf %33, %142 : vector<8x256xf32>
    %144 = tpu.concatenate %134, %137, %140, %143 in 0 : vector<8x256xf32>, vector<8x256xf32>, vector<8x256xf32>, vector<8x256xf32> -> vector<32x256xf32>
    %145 = arith.truncf %144 : vector<32x256xf32> to vector<32x256xbf16>
    %146 = vector.extract_strided_slice %2 {offsets = [0, 8], sizes = [8, 1], strides = [1, 1]} : vector<8x9xf32> to vector<8x1xf32>
    %147 = vector.broadcast %146 : vector<8x1xf32> to vector<8x256xf32>
    %148 = arith.mulf %12, %147 : vector<8x256xf32>
    %149 = vector.extract_strided_slice %2 {offsets = [0, 8], sizes = [8, 1], strides = [1, 1]} : vector<8x9xf32> to vector<8x1xf32>
    %150 = vector.broadcast %149 : vector<8x1xf32> to vector<8x256xf32>
    %151 = arith.mulf %19, %150 : vector<8x256xf32>
    %152 = vector.extract_strided_slice %2 {offsets = [0, 8], sizes = [8, 1], strides = [1, 1]} : vector<8x9xf32> to vector<8x1xf32>
    %153 = vector.broadcast %152 : vector<8x1xf32> to vector<8x256xf32>
    %154 = arith.mulf %26, %153 : vector<8x256xf32>
    %155 = vector.extract_strided_slice %2 {offsets = [0, 8], sizes = [8, 1], strides = [1, 1]} : vector<8x9xf32> to vector<8x1xf32>
    %156 = vector.broadcast %155 : vector<8x1xf32> to vector<8x256xf32>
    %157 = arith.mulf %33, %156 : vector<8x256xf32>
    %158 = tpu.concatenate %148, %151, %154, %157 in 0 : vector<8x256xf32>, vector<8x256xf32>, vector<8x256xf32>, vector<8x256xf32> -> vector<32x256xf32>
    %159 = arith.truncf %158 : vector<32x256xf32> to vector<32x256xbf16>
    %160 = tpu.concatenate %47, %61, %75, %89, %103, %117, %131, %145, %159 in 1 : vector<32x256xbf16>, vector<32x256xbf16>, vector<32x256xbf16>, vector<32x256xbf16>, vector<32x256xbf16>, vector<32x256xbf16>, vector<32x256xbf16>, vector<32x256xbf16>, vector<32x256xbf16> -> vector<32x2304xbf16>
    %c0_27 = arith.constant 0 : index
    %c0_28 = arith.constant 0 : index
    %161 = vector.load %arg8[%c0_27, %c0_28] : memref<2304x64xbf16, #tpu.memory_space<vmem>>, vector<2304x64xbf16>
    %cst_29 = arith.constant dense<0.000000e+00> : vector<32x64xf32>
    %162 = tpu.matmul %160, %161, %cst_29 {dimension_numbers = #tpu.dot_dimension_numbers<[1], [0], [0], [1], [0, 0, 1, 1], [], []>} : vector<32x2304xbf16>, vector<2304x64xbf16>, vector<32x64xf32> -> vector<32x64xf32>
    %163 = tpu.concatenate %7, %14, %21, %28 in 0 : vector<8x256xf32>, vector<8x256xf32>, vector<8x256xf32>, vector<8x256xf32> -> vector<32x256xf32>
    %164 = arith.truncf %163 : vector<32x256xf32> to vector<32x256xbf16>
    %c0_30 = arith.constant 0 : index
    %c0_31 = arith.constant 0 : index
    %165 = vector.load %arg9[%c0_30, %c0_31] : memref<256x64xbf16, #tpu.memory_space<vmem>>, vector<256x64xbf16>
    %cst_32 = arith.constant dense<0.000000e+00> : vector<32x64xf32>
    %166 = tpu.matmul %164, %165, %cst_32 {dimension_numbers = #tpu.dot_dimension_numbers<[1], [0], [0], [1], [0, 0, 1, 1], [], []>} : vector<32x256xbf16>, vector<256x64xbf16>, vector<32x64xf32> -> vector<32x64xf32>
    %167 = vector.extract_strided_slice %162 {offsets = [0, 0], sizes = [8, 64], strides = [1, 1]} : vector<32x64xf32> to vector<8x64xf32>
    %168 = vector.broadcast %3 : vector<8x1xf32> to vector<8x64xf32>
    %169 = arith.addf %167, %168 : vector<8x64xf32>
    %cst_33 = arith.constant dense<0.000000e+00> : vector<24x64xf32>
    %170 = tpu.matmul %4, %169, %cst_33 {dimension_numbers = #tpu.dot_dimension_numbers<[1], [0], [0], [1], [0, 0, 1, 1], [], []>} : vector<24x8xf32>, vector<8x64xf32>, vector<24x64xf32> -> vector<24x64xf32>
    %171 = vector.broadcast %5 : vector<24x1xf32> to vector<24x64xf32>
    %172 = arith.addf %170, %171 : vector<24x64xf32>
    %cst_34 = arith.constant 0.000000e+00 : f32
    %173 = vector.broadcast %cst_34 : f32 to vector<24x64xf32>
    %174 = arith.maximumf %172, %173 : vector<24x64xf32>
    %c0_35 = arith.constant 0 : index
    %c0_36 = arith.constant 0 : index
    %c0_37 = arith.constant 0 : index
    %175 = vector.load %arg10[%c0_35, %c0_36, %c0_37] : memref<1x32x256xf32, #tpu.memory_space<vmem>>, vector<1x24x64xf32>
    %176 = vector.shape_cast %175 : vector<1x24x64xf32> to vector<24x64xf32>
    %177 = vector.shape_cast %174 : vector<24x64xf32> to vector<1x24x64xf32>
    tpu.vector_store %arg10[%c0_35, %c0_36, %c0_37], %177 {strides = array<i32>} : memref<1x32x256xf32, #tpu.memory_space<vmem>>, vector<1x24x64xf32>,
    %178 = vector.extract_strided_slice %166 {offsets = [0, 0], sizes = [8, 64], strides = [1, 1]} : vector<32x64xf32> to vector<8x64xf32>
    %cst_38 = arith.constant 0.000000e+00 : f32
    %179 = vector.broadcast %cst_38 : f32 to vector<8x64xf32>
    %180 = arith.maximumf %178, %179 : vector<8x64xf32>
    %c0_39 = arith.constant 0 : index
    %c24 = arith.constant 24 : index
    %c0_40 = arith.constant 0 : index
    %181 = vector.load %arg10[%c0_39, %c24, %c0_40] : memref<1x32x256xf32, #tpu.memory_space<vmem>>, vector<1x8x64xf32>
    %182 = vector.shape_cast %181 : vector<1x8x64xf32> to vector<8x64xf32>
    %183 = vector.shape_cast %180 : vector<8x64xf32> to vector<1x8x64xf32>
    tpu.vector_store %arg10[%c0_39, %c24, %c0_40], %183 {strides = array<i32>} : memref<1x32x256xf32, #tpu.memory_space<vmem>>, vector<1x8x64xf32>,
    %184 = vector.extract_strided_slice %162 {offsets = [8, 0], sizes = [8, 64], strides = [1, 1]} : vector<32x64xf32> to vector<8x64xf32>
    %185 = vector.broadcast %3 : vector<8x1xf32> to vector<8x64xf32>
    %186 = arith.addf %184, %185 : vector<8x64xf32>
    %cst_41 = arith.constant dense<0.000000e+00> : vector<24x64xf32>
    %187 = tpu.matmul %4, %186, %cst_41 {dimension_numbers = #tpu.dot_dimension_numbers<[1], [0], [0], [1], [0, 0, 1, 1], [], []>} : vector<24x8xf32>, vector<8x64xf32>, vector<24x64xf32> -> vector<24x64xf32>
    %188 = vector.broadcast %5 : vector<24x1xf32> to vector<24x64xf32>
    %189 = arith.addf %187, %188 : vector<24x64xf32>
    %cst_42 = arith.constant 0.000000e+00 : f32
    %190 = vector.broadcast %cst_42 : f32 to vector<24x64xf32>
    %191 = arith.maximumf %189, %190 : vector<24x64xf32>
    %c0_43 = arith.constant 0 : index
    %c0_44 = arith.constant 0 : index
    %c64 = arith.constant 64 : index
    %192 = vector.load %arg10[%c0_43, %c0_44, %c64] : memref<1x32x256xf32, #tpu.memory_space<vmem>>, vector<1x24x64xf32>
    %193 = vector.shape_cast %192 : vector<1x24x64xf32> to vector<24x64xf32>
    %194 = vector.shape_cast %191 : vector<24x64xf32> to vector<1x24x64xf32>
    tpu.vector_store %arg10[%c0_43, %c0_44, %c64], %194 {strides = array<i32>} : memref<1x32x256xf32, #tpu.memory_space<vmem>>, vector<1x24x64xf32>,
    %195 = vector.extract_strided_slice %166 {offsets = [8, 0], sizes = [8, 64], strides = [1, 1]} : vector<32x64xf32> to vector<8x64xf32>
    %cst_45 = arith.constant 0.000000e+00 : f32
    %196 = vector.broadcast %cst_45 : f32 to vector<8x64xf32>
    %197 = arith.maximumf %195, %196 : vector<8x64xf32>
    %c0_46 = arith.constant 0 : index
    %c24_47 = arith.constant 24 : index
    %c64_48 = arith.constant 64 : index
    %198 = vector.load %arg10[%c0_46, %c24_47, %c64_48] : memref<1x32x256xf32, #tpu.memory_space<vmem>>, vector<1x8x64xf32>
    %199 = vector.shape_cast %198 : vector<1x8x64xf32> to vector<8x64xf32>
    %200 = vector.shape_cast %197 : vector<8x64xf32> to vector<1x8x64xf32>
    tpu.vector_store %arg10[%c0_46, %c24_47, %c64_48], %200 {strides = array<i32>} : memref<1x32x256xf32, #tpu.memory_space<vmem>>, vector<1x8x64xf32>,
    %201 = vector.extract_strided_slice %162 {offsets = [16, 0], sizes = [8, 64], strides = [1, 1]} : vector<32x64xf32> to vector<8x64xf32>
    %202 = vector.broadcast %3 : vector<8x1xf32> to vector<8x64xf32>
    %203 = arith.addf %201, %202 : vector<8x64xf32>
    %cst_49 = arith.constant dense<0.000000e+00> : vector<24x64xf32>
    %204 = tpu.matmul %4, %203, %cst_49 {dimension_numbers = #tpu.dot_dimension_numbers<[1], [0], [0], [1], [0, 0, 1, 1], [], []>} : vector<24x8xf32>, vector<8x64xf32>, vector<24x64xf32> -> vector<24x64xf32>
    %205 = vector.broadcast %5 : vector<24x1xf32> to vector<24x64xf32>
    %206 = arith.addf %204, %205 : vector<24x64xf32>
    %cst_50 = arith.constant 0.000000e+00 : f32
    %207 = vector.broadcast %cst_50 : f32 to vector<24x64xf32>
    %208 = arith.maximumf %206, %207 : vector<24x64xf32>
    %c0_51 = arith.constant 0 : index
    %c0_52 = arith.constant 0 : index
    %c128 = arith.constant 128 : index
    %209 = vector.load %arg10[%c0_51, %c0_52, %c128] : memref<1x32x256xf32, #tpu.memory_space<vmem>>, vector<1x24x64xf32>
    %210 = vector.shape_cast %209 : vector<1x24x64xf32> to vector<24x64xf32>
    %211 = vector.shape_cast %208 : vector<24x64xf32> to vector<1x24x64xf32>
    tpu.vector_store %arg10[%c0_51, %c0_52, %c128], %211 {strides = array<i32>} : memref<1x32x256xf32, #tpu.memory_space<vmem>>, vector<1x24x64xf32>,
    %212 = vector.extract_strided_slice %166 {offsets = [16, 0], sizes = [8, 64], strides = [1, 1]} : vector<32x64xf32> to vector<8x64xf32>
    %cst_53 = arith.constant 0.000000e+00 : f32
    %213 = vector.broadcast %cst_53 : f32 to vector<8x64xf32>
    %214 = arith.maximumf %212, %213 : vector<8x64xf32>
    %c0_54 = arith.constant 0 : index
    %c24_55 = arith.constant 24 : index
    %c128_56 = arith.constant 128 : index
    %215 = vector.load %arg10[%c0_54, %c24_55, %c128_56] : memref<1x32x256xf32, #tpu.memory_space<vmem>>, vector<1x8x64xf32>
    %216 = vector.shape_cast %215 : vector<1x8x64xf32> to vector<8x64xf32>
    %217 = vector.shape_cast %214 : vector<8x64xf32> to vector<1x8x64xf32>
    tpu.vector_store %arg10[%c0_54, %c24_55, %c128_56], %217 {strides = array<i32>} : memref<1x32x256xf32, #tpu.memory_space<vmem>>, vector<1x8x64xf32>,
    %218 = vector.extract_strided_slice %162 {offsets = [24, 0], sizes = [8, 64], strides = [1, 1]} : vector<32x64xf32> to vector<8x64xf32>
    %219 = vector.broadcast %3 : vector<8x1xf32> to vector<8x64xf32>
    %220 = arith.addf %218, %219 : vector<8x64xf32>
    %cst_57 = arith.constant dense<0.000000e+00> : vector<24x64xf32>
    %221 = tpu.matmul %4, %220, %cst_57 {dimension_numbers = #tpu.dot_dimension_numbers<[1], [0], [0], [1], [0, 0, 1, 1], [], []>} : vector<24x8xf32>, vector<8x64xf32>, vector<24x64xf32> -> vector<24x64xf32>
    %222 = vector.broadcast %5 : vector<24x1xf32> to vector<24x64xf32>
    %223 = arith.addf %221, %222 : vector<24x64xf32>
    %cst_58 = arith.constant 0.000000e+00 : f32
    %224 = vector.broadcast %cst_58 : f32 to vector<24x64xf32>
    %225 = arith.maximumf %223, %224 : vector<24x64xf32>
    %c0_59 = arith.constant 0 : index
    %c0_60 = arith.constant 0 : index
    %c192 = arith.constant 192 : index
    %226 = vector.load %arg10[%c0_59, %c0_60, %c192] : memref<1x32x256xf32, #tpu.memory_space<vmem>>, vector<1x24x64xf32>
    %227 = vector.shape_cast %226 : vector<1x24x64xf32> to vector<24x64xf32>
    %228 = vector.shape_cast %225 : vector<24x64xf32> to vector<1x24x64xf32>
    tpu.vector_store %arg10[%c0_59, %c0_60, %c192], %228 {strides = array<i32>} : memref<1x32x256xf32, #tpu.memory_space<vmem>>, vector<1x24x64xf32>,
    %229 = vector.extract_strided_slice %166 {offsets = [24, 0], sizes = [8, 64], strides = [1, 1]} : vector<32x64xf32> to vector<8x64xf32>
    %cst_61 = arith.constant 0.000000e+00 : f32
    %230 = vector.broadcast %cst_61 : f32 to vector<8x64xf32>
    %231 = arith.maximumf %229, %230 : vector<8x64xf32>
    %c0_62 = arith.constant 0 : index
    %c24_63 = arith.constant 24 : index
    %c192_64 = arith.constant 192 : index
    %232 = vector.load %arg10[%c0_62, %c24_63, %c192_64] : memref<1x32x256xf32, #tpu.memory_space<vmem>>, vector<1x8x64xf32>
    %233 = vector.shape_cast %232 : vector<1x8x64xf32> to vector<8x64xf32>
    %234 = vector.shape_cast %231 : vector<8x64xf32> to vector<1x8x64xf32>
    tpu.vector_store %arg10[%c0_62, %c24_63, %c192_64], %234 {strides = array<i32>} : memref<1x32x256xf32, #tpu.memory_space<vmem>>, vector<1x8x64xf32>,
    return
  }
  func.func @transform_0(%arg0: i32) -> (i32, i32, i32) {
    %c0_i32 = arith.constant 0 : i32
    %c0_i32_0 = arith.constant 0 : i32
    %c0_i32_1 = arith.constant 0 : i32
    return %arg0, %c0_i32, %c0_i32_0 : i32, i32, i32
  }
  func.func @transform_1(%arg0: i32) -> (i32, i32) {
    %c0_i32 = arith.constant 0 : i32
    %c0_i32_0 = arith.constant 0 : i32
    %c0_i32_1 = arith.constant 0 : i32
    return %c0_i32, %c0_i32_0 : i32, i32
  }
  func.func @transform_2(%arg0: i32) -> (i32, i32) {
    %c0_i32 = arith.constant 0 : i32
    %c0_i32_0 = arith.constant 0 : i32
    %c0_i32_1 = arith.constant 0 : i32
    return %c0_i32, %c0_i32_0 : i32, i32
  }
  func.func @transform_3(%arg0: i32) -> (i32, i32) {
    %c0_i32 = arith.constant 0 : i32
    %c0_i32_0 = arith.constant 0 : i32
    %c0_i32_1 = arith.constant 0 : i32
    return %c0_i32, %c0_i32_0 : i32, i32
  }
  func.func @transform_4(%arg0: i32) -> (i32, i32) {
    %c0_i32 = arith.constant 0 : i32
    %c0_i32_0 = arith.constant 0 : i32
    %c0_i32_1 = arith.constant 0 : i32
    return %c0_i32, %c0_i32_0 : i32, i32
  }
  func.func @transform_5(%arg0: i32) -> (i32, i32) {
    %c0_i32 = arith.constant 0 : i32
    %c0_i32_0 = arith.constant 0 : i32
    %c0_i32_1 = arith.constant 0 : i32
    return %c0_i32, %c0_i32_0 : i32, i32
  }
  func.func @transform_6(%arg0: i32) -> (i32, i32) {
    %c0_i32 = arith.constant 0 : i32
    %c0_i32_0 = arith.constant 0 : i32
    %c0_i32_1 = arith.constant 0 : i32
    return %c0_i32, %c0_i32_0 : i32, i32
  }
  func.func @transform_7(%arg0: i32) -> (i32, i32) {
    %c0_i32 = arith.constant 0 : i32
    %c0_i32_0 = arith.constant 0 : i32
    %c0_i32_1 = arith.constant 0 : i32
    return %c0_i32, %c0_i32_0 : i32, i32
  }
  func.func @transform_8(%arg0: i32) -> (i32, i32) {
    %c0_i32 = arith.constant 0 : i32
    %c0_i32_0 = arith.constant 0 : i32
    %c0_i32_1 = arith.constant 0 : i32
    return %c0_i32, %c0_i32_0 : i32, i32
  }
  func.func @transform_9(%arg0: i32) -> (i32, i32, i32) {
    %c0_i32 = arith.constant 0 : i32
    %c0_i32_0 = arith.constant 0 : i32
    %c0_i32_1 = arith.constant 0 : i32
    return %arg0, %c0_i32, %c0_i32_0 : i32, i32, i32
  }
}

</mosaic_0001>

<bundles_post_ra>
// kernel: tpu_custom_call.1
= control target key start
LH: loop header
LB: loop body
LE: loop exit
PB: predicated region body
PF: predicated region fallthrough
CT: control target
= control target key end

     0   :  { %14 = vsyncpa [#allocation3], 0  ;;  %s5048_s0 = inlined_call_operand.vmem [shape: f32[8,8,256], index: 0, kind: input, shape index: {}]   ;;  %s5049_s1 = inlined_call_operand.vmem [shape: f32[8,8], index: 1, kind: input, shape index: {}]   ;;  %s5050_s2 = inlined_call_operand.vmem [shape: f32[8,1], index: 2, kind: input, shape index: {}]   ;;  %s5051_s3 = inlined_call_operand.vmem [shape: f32[8,9], index: 3, kind: input, shape index: {}]   ;;  %s5052_s4 = inlined_call_operand.vmem [shape: f32[8,1], index: 4, kind: input, shape index: {}]   ;;  %s5053_s5 = inlined_call_operand.vmem [shape: f32[24,8], index: 5, kind: input, shape index: {}]   ;;  %s5054_s6 = inlined_call_operand.vmem [shape: f32[24,1], index: 6, kind: input, shape index: {}]   ;;  %s5055_s7 = inlined_call_operand.vmem [shape: bf16[2304,64], index: 7, kind: input, shape index: {}]   ;;  %s5056_s8 = inlined_call_operand.vmem [shape: bf16[256,64], index: 8, kind: input, shape index: {}]   ;;  %s5057_s9 = inlined_call_operand.hbm [shape: f32[2,32,256], index: 9, kind: output, shape index: {}]  }
   0x1   :  { %16 = vsyncpa [#allocation3 + $0x1], 0  ;;  %s3963_s30 = smov 0   ;;  %s3965_s10 = smov 0  }
   0x2   :  { %s3967_s11 = smov 0   ;;  %s3969_s12 = smov 0  }
   0x3 LB: > { %s3984_s13 = sadd.s32 4294967295, %s3896_s12   ;;  %s3073_s14 = sadd.s32 4294967294, %s3896_s12   ;;  %s3896_s12 = sphi %s3969_s12, %s5118_s12   ;;  %s3892_s11 = sphi %s3967_s11, %s5117_s11   ;;  %s3888_s10 = sphi %s3965_s10, %s5116_s10   ;;  %s3884_s30 = sphi %s3963_s30, %s5115_s30  }
   0x4   : > { %s3988_s15 = sadd.s32 1, %s3896_s12   ;;  %s223_s16 = sadd.s32 1, %s3892_s11 }
   0x5   : > { %s220_s17 = ssub.s32 %s3896_s12, %s3988_s15  ;;  %p233_p0 = scmp.ne.s32.totalorder %s3892_s11, %s3888_s10 }
   0x6   : > { %p221_p1 = scmp.eq.s32.totalorder %s220_s17, 0  ;;  %p234_p2 = scmp.eq.s32.totalorder %s3984_s13, 1 }
   0x7   : > { %p239_p3 = scmp.ne.s32.totalorder %s3888_s10, %s3884_s30  ;;  %p240_p4 = scmp.eq.s32.totalorder %s3073_s14, 1 }
   0x8   : > { %s3999_s18 = scalar_select %p221_p1, %s3892_s11, %s223_s16  }
   0x9   : > { %p4001_p5 = por %p234_p2, %p233_p0  ;;  %p4005_p6 = por %p240_p4, %p239_p3 }
   0xa   : > { %p3076_p7 = scmp.ge.s32.totalorder %s3896_s12, 1  ;;  %p292_p8 = scmp.lt.s32.totalorder %s3896_s12, 3 }
   0xc   : > { %p293_p9 = pnand %p3076_p7, %p292_p8 }
   0xe   : > { %296 = sbr.rel (%p293_p9) target bundleno = 916 (0x394), region = 56 }
  0x13   : > { %s3078_s21 = sshll.u32 %s3984_s13, 2  ;;  %v4015_v0 = vld [vmem:[%s5051_s3] sm:$0xff]  ;;  %v5058_v1 = vmov 0.0   ;;  %v3899_v3 = vmov 1   ;;  %v3900_v4 = vmov 0   ;;  %vm354_vm0 = vcmask 64512  }
  0x14   : > { %p330_p10 = scmp.lt.s32.totalorder %s3078_s21, 7  ;;  %422 = vmatprep.mubr.f32.mxu0 %v5058_v1  ;;  %498 = vmatprep.mubr.f32.mxu1 %v5058_v1  ;;  %v338_v2 = vld [vmem:[%s5050_s2] sm:$0xff]  ;;  %v3901_v9 = vmov 2   ;;  %v3674_v18 = vld [vmem:[%s5055_s7 + $0x78] sm:$0xff]   ;;  %v3678_v22 = vld [vmem:[%s5055_s7 + $0x70] sm:$0xff]   ;;  %v3902_v24 = vmov 3  }
  0x15   : > { %3664 = vset.pattern.permute.xlu1 %v3899_v3  ;;  %3663 = vset.pattern.permute.xlu0 %v3900_v4  ;;  %v337_v5 = vld [vmem:[%s5049_s1] sm:$0xff]  ;;  %v3675_v19 = vld [vmem:[%s5055_s7 + $0xf8] sm:$0xff]   ;;  %v3679_v23 = vld [vmem:[%s5055_s7 + $0xf0] sm:$0xff]   ;;  %v3903_v29 = vmov 4   ;;  %v3904_v31 = vmov 6   ;;  %v3905_v36 = vmov 5  }
  0x16   : > { %s5120_s21 = smov (!%p330_p10, %s3078_s21), 7  ;;  %677 = vperm.xlu1 %3664, %v4015_v0   ;;  %351 = vperm.xlu0 %3663, %v338_v2   ;;  %v3676_v20 = vld [vmem:[%s5055_s7 + $0x38] sm:$0xff]   ;;  %v3680_v25 = vld [vmem:[%s5055_s7 + $0x30] sm:$0xff]   ;;  %v3682_v27 = vld [vmem:[%s5055_s7 + $0x68] sm:$0xff]   ;;  %v3906_v42 = vmov 7   ;;  %v3907_v45 = vmov 8  }
  0x17   : > { %s3268_s26 = sshll.u32 %s5120_s21, 4  ;;  %v3677_v21 = vld [vmem:[%s5055_s7 + $0xb8] sm:$0xff]   ;;  %v3681_v26 = vld [vmem:[%s5055_s7 + $0xb0] sm:$0xff]   ;;  %v3683_v28 = vld [vmem:[%s5055_s7 + $0xe8] sm:$0xff]   ;;  %vm3908_vm1 = vmmov 0   ;;  %s326_s23 = sand.u32 1, %s3888_s10  }
  0x18   : > { %s4027_s29 = scalar_lea.vmem %s5048_s0, %s3268_s26  ;;  %v3684_v30 = vld [vmem:[%s5055_s7 + $0x28] sm:$0xff]   ;;  %v3686_v33 = vld [vmem:[%s5055_s7 + $0x60] sm:$0xff]   ;;  %v3690_v38 = vld [vmem:[%s5055_s7 + $0x58] sm:$0xff]   ;;  %s3077_s24 = sshll.u32 %s326_s23, 6  ;;  %vm2691_vm2 = vcmask 523264   ;;  %vm2793_vm3 = vcmask 1048064  }
  0x19   : > { %v4033_v6 = vld [vmem:[%s4027_s29 + $0x8] sm:$0xff]  ;;  %v4036_v7 = vld [vmem:[%s4027_s29 + $0x18] sm:$0xff]  ;;  %v4039_v8 = vld [vmem:[%s4027_s29] sm:$0xff]  ;;  %s3909_s25 = smov 64   ;;  %s3269_s26 = sshll.u32 %s3984_s13, 10 }
  0x1a   : > { %5068 = vst [vmem:[#allocation5_spill] sm:$0xff] %v4039_v8  ;;  %3665 = vset.pattern.permute.xlu1 %v3901_v9  ;;  %661 = vperm.xlu0 %3663, %v4015_v0   ;;  %v4047_v11 = vld [vmem:[%s4027_s29 + $0x10] sm:$0xff]  ;;  %v4050_v12 = vld [vmem:[%s4027_s29 + $0x28] sm:$0xff]  ;;  %v4053_v13 = vld [vmem:[%s4027_s29 + $0x38] sm:$0xff]  ;;  %s4998_s16 = scalar_lea.hbm %s5057_s9, %s3269_s26  ;;  %s5008_s13 = scalar_lea.sflag [#allocation3], %s326_s23 }
  0x1b   : > { %388 = vmatprep.subr.mxu0 %v4033_v6  ;;  %464 = vmatprep.subr.mxu1 %v4036_v7  ;;  %5069 = vst [vmem:[#allocation6_spill] sm:$0xff] %v4047_v11  ;;  %5070 = vst [vmem:[#allocation7_spill] sm:$0xff] %v4050_v12  ;;  %v3085_v16 = vld [vmem:[%s4027_s29 + $0x20] sm:$0xff]  ;;  %v3088_v17 = vld [vmem:[%s4027_s29 + $0x30] sm:$0xff]  ;;  %s3910_s21 = smov [#allocation2]  }
  0x1c   : > { %5071 = vst [vmem:[#allocation8_spill] sm:$0xff] %v4053_v13  ;;  %389 = vmatpush1.msra.mxu0 %v4039_v8  ;;  %465 = vmatpush1.msra.mxu1 %v4047_v11  ;;  %v3685_v32 = vld [vmem:[%s5055_s7 + $0xa8] sm:$0xff]   ;;  %v3687_v34 = vld [vmem:[%s5055_s7 + $0xe0] sm:$0xff]   ;;  %v3691_v39 = vld [vmem:[%s5055_s7 + $0xd8] sm:$0xff]   ;;  %s3840_s22 = sshll.u32 %s3910_s21, 4  ;;  %s3841_s22 = int_to_ptr.vmem [resolvable:$false] %s3840_s22 }
  0x1d   : > { %3081 = vmatmul.mubr.msk.f32.vlgmr.msra.gmra.mxu0 %vm354_vm0, %v337_v5  ;;  %3084 = vmatmul.mubr.msk.f32.vlgmr.msra.gmra.mxu1 %vm354_vm0, %v337_v5  ;;  %v3688_v35 = vld [vmem:[%s5055_s7 + $0x20] sm:$0xff]   ;;  %v3692_v40 = vld [vmem:[%s5055_s7 + $0x18] sm:$0xff]   ;;  %v3694_v43 = vld [vmem:[%s5055_s7 + $0x50] sm:$0xff]  }
  0x1e   : > { %540 = vmatprep.subr.mxu0 %v4050_v12  ;;  %616 = vmatprep.subr.mxu1 %v4053_v13  ;;  %v3689_v37 = vld [vmem:[%s5055_s7 + $0xa0] sm:$0xff]   ;;  %v3693_v41 = vld [vmem:[%s5055_s7 + $0x98] sm:$0xff]   ;;  %v3695_v44 = vld [vmem:[%s5055_s7 + $0xd0] sm:$0xff]  }
  0x1f   : > { %541 = vmatpush1.msra.mxu0 %v3085_v16  ;;  %574 = vmatprep.mubr.f32.mxu0 %v5058_v1  ;;  %v3696_v46 = vld [vmem:[%s5055_s7 + $0x10] sm:$0xff]   ;;  %v3698_v48 = vld [vmem:[%s5055_s7 + $0x48] sm:$0xff]   ;;  %v3702_v52 = vld [vmem:[%s5055_s7 + $0x40] sm:$0xff]  }
  0x20   : > { %617 = vmatpush1.msra.mxu1 %v3088_v17  ;;  %650 = vmatprep.mubr.f32.mxu1 %v5058_v1  ;;  %v3697_v47 = vld [vmem:[%s5055_s7 + $0x90] sm:$0xff]   ;;  %v3699_v49 = vld [vmem:[%s5055_s7 + $0xc8] sm:$0xff]   ;;  %v3703_v53 = vld [vmem:[%s5055_s7 + $0xc0] sm:$0xff]  }
  0x21   : > { %3087 = vmatmul.mubr.msk.f32.vlgmr.msra.gmra.mxu0 %vm354_vm0, %v337_v5  ;;  %3090 = vmatmul.mubr.msk.f32.vlgmr.msra.gmra.mxu1 %vm354_vm0, %v337_v5  ;;  %v3700_v50 = vld [vmem:[%s5055_s7 + $0x8] sm:$0xff]   ;;  %v3704_v54 = vld [vmem:[%s5055_s7] sm:$0xff]   ;;  %v3706_v56 = vld [vmem:[%s5055_s7 + $0x178] sm:$0xff]  }
  0x22   : > { %693 = vperm.xlu1 %3665, %v4015_v0   ;;  %3666 = vset.pattern.permute.xlu0 %v3902_v24  ;;  %v3701_v51 = vld [vmem:[%s5055_s7 + $0x88] sm:$0xff]   ;;  %v3705_v55 = vld [vmem:[%s5055_s7 + $0x80] sm:$0xff]   ;;  %v3707_v57 = vld [vmem:[%s5055_s7 + $0x1f8] sm:$0xff]  }
  0x23   : > { %709 = vperm.xlu0 %3666, %v4015_v0   ;;  %3270 = vmatprep.subr.bf16.mxu0 %v3674_v18  ;;  %v3732_v10 = vld [vmem:[%s5055_s7 + $0x108] sm:$0xff]   ;;  %v3739_v12 = vld [vmem:[%s5055_s7 + $0x2f8] sm:$0xff]  }
  0x24   : > { %3298 = vmatprep.subr.bf16.mxu1 %v3675_v19  ;;  %3271 = vmatpush3.bf16.msra.mxu0 %v3676_v20  ;;  %v3741_v11 = vld [vmem:[%s5055_s7 + $0x2b8] sm:$0xff]  }
  0x25   : > { %3299 = vmatpush3.bf16.msra.mxu1 %v3677_v21  ;;  %3272 = vmatprep.subr.bf16.mxu0 %v3678_v22 }
  0x26   : > { %3667 = vset.pattern.permute.xlu1 %v3903_v29  ;;  %3300 = vmatprep.subr.bf16.mxu1 %v3679_v23 }
  0x27   : > { %725 = vperm.xlu1 %3667, %v4015_v0   ;;  %3669 = vset.pattern.permute.xlu0 %v3904_v31 }
  0x28   : > { %757 = vperm.xlu0 %3669, %v4015_v0   ;;  %3273 = vmatpush3.bf16.msra.mxu0 %v3680_v25 }
  0x29   : > { %3301 = vmatpush3.bf16.msra.mxu1 %v3681_v26  ;;  %3274 = vmatprep.subr.bf16.mxu0 %v3682_v27 }
  0x2a   : > { %3302 = vmatprep.subr.bf16.mxu1 %v3683_v28 }
  0x2b   : > { %3668 = vset.pattern.permute.xlu1 %v3905_v36 }
  0x2c   : > { %741 = vperm.xlu1 %3668, %v4015_v0   ;;  %3275 = vmatpush3.bf16.msra.mxu0 %v3684_v30 }
  0x2d   : > { %3303 = vmatpush3.bf16.msra.mxu1 %v3685_v32  ;;  %3276 = vmatprep.subr.bf16.mxu0 %v3686_v33 }
  0x2e   : > { %3304 = vmatprep.subr.bf16.mxu1 %v3687_v34  ;;  %3672 = vset.pattern.permute.xlu0 %v3900_v4 }
  0x30   : > { %3670 = vset.pattern.permute.xlu1 %v3906_v42  ;;  %3277 = vmatpush3.bf16.msra.mxu0 %v3688_v35 }
  0x31   : > { %773 = vperm.xlu1 %3670, %v4015_v0   ;;  %3305 = vmatpush3.bf16.msra.mxu1 %v3689_v37 }
  0x32   : > { %3278 = vmatprep.subr.bf16.mxu0 %v3690_v38  ;;  %3306 = vmatprep.subr.bf16.mxu1 %v3691_v39 }
  0x34   : > { %3279 = vmatpush3.bf16.msra.mxu0 %v3692_v40 }
  0x35   : > { %3671 = vset.pattern.permute.xlu1 %v3907_v45  ;;  %3307 = vmatpush3.bf16.msra.mxu1 %v3693_v41  ;;  %v3709_v45 = vld [vmem:[%s5055_s7 + $0x1b8] sm:$0xff]  }
  0x36   : > { %789 = vperm.xlu1 %3671, %v4015_v0   ;;  %3280 = vmatprep.subr.bf16.mxu0 %v3694_v43 }
  0x37   : > { %3308 = vmatprep.subr.bf16.mxu1 %v3695_v44  ;;  %v3708_v44 = vld [vmem:[%s5055_s7 + $0x138] sm:$0xff]  }
  0x38   : > { %3281 = vmatpush3.bf16.msra.mxu0 %v3696_v46 }
  0x39   : > { %3309 = vmatpush3.bf16.msra.mxu1 %v3697_v47  ;;  %3282 = vmatprep.subr.bf16.mxu0 %v3698_v48 }
  0x3a   : > { %3673 = vset.pattern.permute.xlu1 %v3900_v4  ;;  %3310 = vmatprep.subr.bf16.mxu1 %v3699_v49 }
  0x3c   : > { %3283 = vmatpush3.bf16.msra.mxu0 %v3700_v50  ;;  %v3710_v50 = vld [vmem:[%s5055_s7 + $0x170] sm:$0xff]  }
  0x3d   : > { %3311 = vmatpush3.bf16.msra.mxu1 %v3701_v51  ;;  %3284 = vmatprep.subr.bf16.mxu0 %v3702_v52  ;;  %v3711_v51 = vld [vmem:[%s5055_s7 + $0x1f0] sm:$0xff]  }
  0x3e   : > { %3312 = vmatprep.subr.bf16.mxu1 %v3703_v53 }
  0x40   : > { %3285 = vmatpush3.bf16.msra.mxu0 %v3704_v54  ;;  %v3712_v54 = vld [vmem:[%s5055_s7 + $0x130] sm:$0xff]  }
  0x41   : > { %3313 = vmatpush3.bf16.msra.mxu1 %v3705_v55  ;;  %3326 = vmatprep.subr.bf16.mxu0 %v3706_v56  ;;  %v3713_v55 = vld [vmem:[%s5055_s7 + $0x1b0] sm:$0xff]  }
  0x42   : > { %3354 = vmatprep.subr.bf16.mxu1 %v3707_v57 }
  0x91   : > { %v352_v58 = vpop.permute.xlu0 %351  ;;  %v678_v2 = vpop.permute.xlu1 %677 }
  0x95   : > { %v662_v18 = vpop.permute.xlu0 %661 }
  0x9d   : > { %v4198_v35 = vpop.permute.xlu1 %693 }
  0xa2   : > { %v4231_v57 = vpop.permute.xlu1 %725 }
  0xdd   : > { %v424_v59 = vpop.f32.mrf.mxu0  ;;  %v500_v60 = vpop.f32.mrf.mxu1 }
  0xde   : > { %v425_v61 = vadd.f32 %v424_v59, %v352_v58  ;;  %v501_v62 = vadd.f32 %v500_v60, %v352_v58  ;;  %v3715_v59 = vld [vmem:[%s5055_s7 + $0x1e8] sm:$0xff]  }
  0xdf   : > { %v426_v63 = vpop.f32.mrf.mxu0  ;;  %v502_v0 = vpop.f32.mrf.mxu1 }
  0xe0   : > { %v4182_v3 = vmax.f32 %v425_v61, 0.0  ;;  %v4184_v4 = vmax.f32 %v501_v62, 0.0  ;;  %v427_v5 = vadd.f32 %v426_v63, %v352_v58  ;;  %v503_v9 = vadd.f32 %v502_v0, %v352_v58  ;;  %v4242_v63 = vpop.permute.xlu0 %709 }
  0xe1   : > { %v576_v16 = vpop.f32.mrf.mxu0  ;;  %v652_v17 = vpop.f32.mrf.mxu1 }
  0xe2   : > { %v4186_v19 = vmax.f32 %v427_v5, 0.0  ;;  %v4188_v20 = vmax.f32 %v503_v9, 0.0  ;;  %v577_v21 = vadd.f32 %v576_v16, %v352_v58  ;;  %v653_v22 = vadd.f32 %v652_v17, %v352_v58  ;;  %v3717_v17 = vld [vmem:[%s5055_s7 + $0x1a8] sm:$0xff]  }
  0xe3   : > { %v578_v23 = vpop.f32.mrf.mxu0  ;;  %v654_v24 = vpop.f32.mrf.mxu1  ;;  %v664_v25 = vmul.f32 %v662_v18, %v4182_v3  ;;  %v666_v26 = vmul.f32 %v662_v18, %v4184_v4  ;;  %v680_v27 = vmul.f32 %v678_v2, %v4182_v3  ;;  %v682_v28 = vmul.f32 %v678_v2, %v4184_v4 }
  0xe4   : > { %v579_v29 = vadd.f32 %v578_v23, %v352_v58  ;;  %v655_v30 = vadd.f32 %v654_v24, %v352_v58  ;;  %v665_v31 = vmul.f32 %v662_v18, %v4186_v19  ;;  %v667_v32 = vmul.f32 %v662_v18, %v4188_v20  ;;  %v3714_v58 = vld [vmem:[%s5055_s7 + $0x168] sm:$0xff]   ;;  %v3719_v23 = vld [vmem:[%s5055_s7 + $0x1e0] sm:$0xff]   ;;  %v4264_v24 = vpop.permute.xlu1 %741 }
  0xe5   : > { %v681_v33 = vmul.f32 %v678_v2, %v4186_v19  ;;  %v683_v34 = vmul.f32 %v678_v2, %v4188_v20  ;;  %v4200_v36 = vmax.f32 %v577_v21, 0.0  ;;  %v4202_v37 = vmax.f32 %v653_v22, 0.0  ;;  %v3718_v22 = vld [vmem:[%s5055_s7 + $0x160] sm:$0xff]  }
  0xe6   : > { %v4204_v38 = vmax.f32 %v579_v29, 0.0  ;;  %v4206_v39 = vmax.f32 %v655_v30, 0.0  ;;  %v673_v40 = vpack.c.bf16 %v667_v32, %v665_v31  ;;  %v672_v42 = vpack.c.bf16 %v666_v26, %v664_v25  ;;  %v3722_v30 = vld [vmem:[%s5055_s7 + $0x158] sm:$0xff]  }
  0xe7   : > { %v689_v41 = vpack.c.bf16 %v683_v34, %v681_v33  ;;  %v688_v43 = vpack.c.bf16 %v682_v28, %v680_v27  ;;  %v668_v56 = vmul.f32 %v662_v18, %v4200_v36  ;;  %v670_v60 = vmul.f32 %v662_v18, %v4202_v37  ;;  %v3720_v27 = vld [vmem:[%s5055_s7 + $0x120] sm:$0xff]   ;;  %v3723_v31 = vld [vmem:[%s5055_s7 + $0x1d8] sm:$0xff]  }
  0xe8   : > { %v669_v46 = vmul.f32 %v662_v18, %v4204_v38  ;;  %v671_v47 = vmul.f32 %v662_v18, %v4206_v39  ;;  %v685_v48 = vmul.f32 %v678_v2, %v4204_v38  ;;  %v687_v49 = vmul.f32 %v678_v2, %v4206_v39  ;;  %1988 = vmatprep.mubr.bf16.mxu0 %v673_v40  ;;  %v3721_v28 = vld [vmem:[%s5055_s7 + $0x1a0] sm:$0xff]  }
  0xe9   : > { %2037 = vmatprep.mubr.bf16.mxu1 %v689_v41  ;;  %1989 = vmatmul.mubr.bf16.vlgmr.msra.gmra.mxu0 %v672_v42  ;;  %v684_v61 = vmul.f32 %v678_v2, %v4200_v36  ;;  %v686_v62 = vmul.f32 %v678_v2, %v4202_v37  ;;  %v697_v0 = vmul.f32 %v4198_v35, %v4186_v19  ;;  %v3716_v2 = vld [vmem:[%s5055_s7 + $0x128] sm:$0xff]  }
  0xea   : > { %2038 = vmatmul.mubr.bf16.vlgmr.msra.gmra.mxu1 %v688_v43  ;;  %v675_v52 = vpack.c.bf16 %v671_v47, %v669_v46  ;;  %v691_v53 = vpack.c.bf16 %v687_v49, %v685_v48  ;;  %3327 = vmatpush3.bf16.msra.mxu0 %v3708_v44  ;;  %v699_v5 = vmul.f32 %v4198_v35, %v4188_v20  ;;  %v758_v46 = vpop.permute.xlu0 %757  ;;  %v3724_v47 = vld [vmem:[%s5055_s7 + $0x118] sm:$0xff]   ;;  %v3737_v49 = vld [vmem:[%s5055_s7 + $0x180] sm:$0xff]  }
  0xeb   : > { %3355 = vmatpush3.bf16.msra.mxu1 %v3709_v45  ;;  %3328 = vmatprep.subr.bf16.mxu0 %v3710_v50  ;;  %v713_v9 = vmul.f32 %v4242_v63, %v4186_v19  ;;  %v715_v16 = vmul.f32 %v4242_v63, %v4188_v20  ;;  %v674_v18 = vpack.c.bf16 %v670_v60, %v668_v56  ;;  %v3725_v48 = vld [vmem:[%s5055_s7 + $0x198] sm:$0xff]  }
  0xec   : > { %1996 = vmatprep.mubr.bf16.mxu0 %v675_v52  ;;  %2045 = vmatprep.mubr.bf16.mxu1 %v691_v53  ;;  %v690_v21 = vpack.c.bf16 %v686_v62, %v684_v61  ;;  %v705_v25 = vpack.c.bf16 %v699_v5, %v697_v0  ;;  %v4274_v29 = vmul.f32 %v4231_v57, %v4182_v3  ;;  %v774_v52 = vpop.permute.xlu1 %773  ;;  %v3726_v53 = vld [vmem:[%s5055_s7 + $0x150] sm:$0xff]  }
  0xed   : > { %3356 = vmatprep.subr.bf16.mxu1 %v3711_v51  ;;  %v721_v26 = vpack.c.bf16 %v715_v16, %v713_v9  ;;  %v4284_v32 = vmul.f32 %v4231_v57, %v4184_v4  ;;  %v4288_v33 = vmul.f32 %v4264_v24, %v4182_v3  ;;  %v4292_v34 = vmul.f32 %v4198_v35, %v4182_v3 }
  0xee   : > { %3329 = vmatpush3.bf16.msra.mxu0 %v3712_v54  ;;  %v4296_v40 = vmul.f32 %v4264_v24, %v4184_v4  ;;  %v4300_v41 = vmul.f32 %v4231_v57, %v4204_v38  ;;  %v4306_v43 = vmul.f32 %v4231_v57, %v4206_v39  ;;  %v4310_v44 = vmul.f32 %v4264_v24, %v4204_v38  ;;  %v3727_v54 = vld [vmem:[%s5055_s7 + $0x1d0] sm:$0xff]  }
  0xef   : > { %3357 = vmatpush3.bf16.msra.mxu1 %v3713_v55  ;;  %3330 = vmatprep.subr.bf16.mxu0 %v3714_v58  ;;  %v4314_v45 = vmul.f32 %v4264_v24, %v4206_v39  ;;  %v4326_v50 = vmul.f32 %v4231_v57, %v4200_v36  ;;  %v4330_v51 = vmul.f32 %v4231_v57, %v4202_v37  ;;  %v3736_v55 = vld [vmem:[%s5055_s7 + $0x100] sm:$0xff]  }
  0xf0   : > { %3358 = vmatprep.subr.bf16.mxu1 %v3715_v59  ;;  %v4344_v58 = vmul.f32 %v4264_v24, %v4200_v36  ;;  %v4350_v60 = vmul.f32 %v4264_v24, %v4202_v37  ;;  %v4353_v61 = vmul.f32 %v758_v46, %v4186_v19  ;;  %v4356_v62 = vmul.f32 %v758_v46, %v4188_v20 }
  0xf1   : > { %1997 = vmatmul.mubr.bf16.gmra.mxu0 %v674_v18  ;;  %v4359_v0 = vmul.f32 %v774_v52, %v4186_v19  ;;  %v4362_v5 = vmul.f32 %v774_v52, %v4188_v20  ;;  %v4365_v9 = vmul.f32 %v758_v46, %v4182_v3  ;;  %v4368_v16 = vmul.f32 %v758_v46, %v4184_v4 }
  0xf2   : > { %2046 = vmatmul.mubr.bf16.gmra.mxu1 %v690_v21  ;;  %3331 = vmatpush3.bf16.msra.mxu0 %v3716_v2  ;;  %v3728_v2 = vld [vmem:[%s5055_s7 + $0x110] sm:$0xff]   ;;  %v4411_v15 = vmul.f32 %v758_v46, %v4200_v36  ;;  %v4414_v14 = vmul.f32 %v758_v46, %v4202_v37  ;;  %v4417_v1 = vmul.f32 %v774_v52, %v4200_v36 }
  0xf3   : > { %3359 = vmatpush3.bf16.msra.mxu1 %v3717_v17  ;;  %2086 = vmatprep.mubr.bf16.mxu0 %v705_v25  ;;  %v3729_v17 = vld [vmem:[%s5055_s7 + $0x190] sm:$0xff]   ;;  %v3731_v25 = vld [vmem:[%s5055_s7 + $0x1c8] sm:$0xff]   ;;  %v698_v21 = vmul.f32 %v4198_v35, %v4184_v4  ;;  %v712_v42 = vmul.f32 %v4242_v63, %v4182_v3 }
  0xf4   : > { %2135 = vmatprep.mubr.bf16.mxu1 %v721_v26  ;;  %3332 = vmatprep.subr.bf16.mxu0 %v3718_v22  ;;  %v4381_v22 = vmul.f32 %v774_v52, %v4182_v3  ;;  %v4430_v26 = vmul.f32 %v774_v52, %v4202_v37 }
  0xf5   : > { %3360 = vmatprep.subr.bf16.mxu1 %v3719_v23  ;;  %v3730_v23 = vld [vmem:[%s5055_s7 + $0x148] sm:$0xff]   ;;  %v704_v8 = vpack.c.bf16 %v698_v21, %v4292_v34  ;;  %v3743_v34 = vld [vmem:[%s5055_s7 + $0x2f0] sm:$0xff]   ;;  %v731_v21 = vmul.f32 %v4231_v57, %v4188_v20 }
  0xf6   : > { %3333 = vmatpush3.bf16.msra.mxu0 %v3720_v27  ;;  %v3733_v27 = vld [vmem:[%s5055_s7 + $0x188] sm:$0xff]  }
  0xf7   : > { %3361 = vmatpush3.bf16.msra.mxu1 %v3721_v28  ;;  %3334 = vmatprep.subr.bf16.mxu0 %v3722_v30  ;;  %v4394_v28 = vmul.f32 %v774_v52, %v4184_v4  ;;  %v4397_v30 = vmul.f32 %v758_v46, %v4204_v38 }
  0xf8   : > { %3362 = vmatprep.subr.bf16.mxu1 %v3723_v31  ;;  %v4400_v31 = vmul.f32 %v758_v46, %v4206_v39 }
  0xfa   : > { %3335 = vmatpush3.bf16.msra.mxu0 %v3724_v47  ;;  %v4403_v47 = vmul.f32 %v774_v52, %v4204_v38 }
  0xfb   : > { %3363 = vmatpush3.bf16.msra.mxu1 %v3725_v48  ;;  %3336 = vmatprep.subr.bf16.mxu0 %v3726_v53  ;;  %v4406_v48 = vmul.f32 %v774_v52, %v4206_v39  ;;  %v790_v53 = vpop.permute.xlu1 %789 }
  0xfc   : > { %3364 = vmatprep.subr.bf16.mxu1 %v3727_v54  ;;  %v4441_v54 = vmul.f32 %v790_v53, %v4186_v19  ;;  %v4444_v46 = vmul.f32 %v790_v53, %v4188_v20  ;;  %v4455_v18 = vmul.f32 %v790_v53, %v4204_v38  ;;  %v4460_v59 = vmul.f32 %v790_v53, %v4206_v39 }
  0xfd   : > { %v4463_v56 = vmul.f32 %v790_v53, %v4200_v36  ;;  %v4466_v52 = vmul.f32 %v790_v53, %v4202_v37 }
  0xfe   : > { %3337 = vmatpush3.bf16.msra.mxu0 %v3728_v2  ;;  %v3734_v2 = vld [vmem:[%s5055_s7 + $0x140] sm:$0xff]  }
  0xff   : > { %3365 = vmatpush3.bf16.msra.mxu1 %v3729_v17  ;;  %3338 = vmatprep.subr.bf16.mxu0 %v3730_v23  ;;  %v3735_v17 = vld [vmem:[%s5055_s7 + $0x1c0] sm:$0xff]   ;;  %v4449_v23 = vmul.f32 %v790_v53, %v4182_v3  ;;  %5072 = vst [vmem:[#allocation9_spill] sm:$0xff] %v4463_v56  ;;  %v3740_v3 = vld [vmem:[%s5055_s7 + $0x238] sm:$0xff]  }
 0x100   : > { %3366 = vmatprep.subr.bf16.mxu1 %v3731_v25  ;;  %v4452_v25 = vmul.f32 %v790_v53, %v4184_v4  ;;  %v719_v53 = vmul.f32 %v4242_v63, %v4206_v39 }
 0x102   : > { %3339 = vmatpush3.bf16.msra.mxu0 %v3732_v10  ;;  %v714_v10 = vmul.f32 %v4242_v63, %v4184_v4  ;;  %v703_v4 = vmul.f32 %v4198_v35, %v4206_v39  ;;  %v3742_v39 = vld [vmem:[%s5055_s7 + $0x270] sm:$0xff]  }
 0x103   : > { %3367 = vmatpush3.bf16.msra.mxu1 %v3733_v27  ;;  %3340 = vmatprep.subr.bf16.mxu0 %v3734_v2  ;;  %v3738_v27 = vld [vmem:[%s5055_s7 + $0x278] sm:$0xff]   ;;  %v701_v2 = vmul.f32 %v4198_v35, %v4204_v38 }
 0x104   : > { %3368 = vmatprep.subr.bf16.mxu1 %v3735_v17  ;;  %v717_v17 = vmul.f32 %v4242_v63, %v4204_v38  ;;  %v720_v13 = vpack.c.bf16 %v714_v10, %v712_v42  ;;  %v702_v42 = vmul.f32 %v4198_v35, %v4202_v37  ;;  %v3748_v10 = vld [vmem:[%s5055_s7 + $0x228] sm:$0xff]  }
 0x105   : > { %v707_v56 = vpack.c.bf16 %v703_v4, %v701_v2  ;;  %v3753_v2 = vld [vmem:[%s5055_s7 + $0x2a0] sm:$0xff]   ;;  %v3754_v4 = vld [vmem:[%s5055_s7 + $0x258] sm:$0xff]  }
 0x106   : > { %3341 = vmatpush3.bf16.msra.mxu0 %v3736_v55  ;;  %v723_v38 = vpack.c.bf16 %v719_v53, %v717_v17  ;;  %v3745_v55 = vld [vmem:[%s5055_s7 + $0x2b0] sm:$0xff]   ;;  %v3755_v17 = vld [vmem:[%s5055_s7 + $0x2d8] sm:$0xff]  }
 0x107   : > { %3369 = vmatpush3.bf16.msra.mxu1 %v3737_v49  ;;  %3382 = vmatprep.subr.bf16.mxu0 %v3738_v27  ;;  %v3744_v49 = vld [vmem:[%s5055_s7 + $0x230] sm:$0xff]   ;;  %v3749_v27 = vld [vmem:[%s5055_s7 + $0x2a8] sm:$0xff]  }
 0x108   : > { %3410 = vmatprep.subr.bf16.mxu1 %v3739_v12  ;;  %v700_v12 = vmul.f32 %v4198_v35, %v4200_v36  ;;  %v3747_v35 = vld [vmem:[%s5055_s7 + $0x2e8] sm:$0xff]  }
 0x109   : > { %2087 = vmatmul.mubr.bf16.vlgmr.msra.gmra.mxu0 %v704_v8  ;;  %v716_v8 = vmul.f32 %v4242_v63, %v4200_v36  ;;  %v745_v36 = vmul.f32 %v4264_v24, %v4186_v19 }
 0x10a   : > { %2136 = vmatmul.mubr.bf16.vlgmr.msra.gmra.mxu1 %v720_v13  ;;  %2094 = vmatprep.mubr.bf16.mxu0 %v707_v56  ;;  %v718_v13 = vmul.f32 %v4242_v63, %v4202_v37  ;;  %v729_v56 = vmul.f32 %v4231_v57, %v4186_v19  ;;  %v747_v37 = vmul.f32 %v4264_v24, %v4188_v20  ;;  %v3750_v19 = vld [vmem:[%s5055_s7 + $0x260] sm:$0xff]  }
 0x10b   : > { %2143 = vmatprep.mubr.bf16.mxu1 %v723_v38  ;;  %3383 = vmatpush3.bf16.msra.mxu0 %v3740_v3  ;;  %v706_v63 = vpack.c.bf16 %v702_v42, %v700_v12  ;;  %v3751_v20 = vld [vmem:[%s5055_s7 + $0x2e0] sm:$0xff]   ;;  %v3756_v38 = vld [vmem:[%s5055_s7 + $0x218] sm:$0xff]   ;;  %v3759_v12 = vld [vmem:[%s5055_s7 + $0x2d0] sm:$0xff]  }
 0x10c   : > { %3411 = vmatpush3.bf16.msra.mxu1 %v3741_v11  ;;  %3384 = vmatprep.subr.bf16.mxu0 %v3742_v39  ;;  %v3746_v11 = vld [vmem:[%s5055_s7 + $0x268] sm:$0xff]   ;;  %v722_v53 = vpack.c.bf16 %v718_v13, %v716_v8  ;;  %v737_v57 = vpack.c.bf16 %v731_v21, %v729_v56  ;;  %v753_v3 = vpack.c.bf16 %v747_v37, %v745_v36  ;;  %v3752_v24 = vld [vmem:[%s5055_s7 + $0x220] sm:$0xff]   ;;  %v3757_v39 = vld [vmem:[%s5055_s7 + $0x298] sm:$0xff]  }
 0x10d   : > { %3412 = vmatprep.subr.bf16.mxu1 %v3743_v34  ;;  %v3758_v34 = vld [vmem:[%s5055_s7 + $0x250] sm:$0xff]   ;;  %v3763_v8 = vld [vmem:[%s5055_s7 + $0x2c8] sm:$0xff]   ;;  %v3768_v21 = vld [vmem:[%s5055_s7 + $0x200] sm:$0xff]  }
 0x10e   : > { %v3760_v42 = vld [vmem:[%s5055_s7 + $0x210] sm:$0xff]   ;;  %v3764_v13 = vld [vmem:[%s5055_s7 + $0x208] sm:$0xff]   ;;  %v3769_v36 = vld [vmem:[%s5055_s7 + $0x280] sm:$0xff]  }
 0x10f   : > { %3385 = vmatpush3.bf16.msra.mxu0 %v3744_v49  ;;  %v3761_v49 = vld [vmem:[%s5055_s7 + $0x290] sm:$0xff]   ;;  %v3765_v56 = vld [vmem:[%s5055_s7 + $0x288] sm:$0xff]   ;;  %v3770_v37 = vld [vmem:[%s5055_s7 + $0x378] sm:$0xff]  }
 0x110   : > { %3413 = vmatpush3.bf16.msra.mxu1 %v3745_v55  ;;  %3386 = vmatprep.subr.bf16.mxu0 %v3746_v11  ;;  %v3762_v55 = vld [vmem:[%s5055_s7 + $0x248] sm:$0xff]   ;;  %v3766_v11 = vld [vmem:[%s5055_s7 + $0x240] sm:$0xff]  }
 0x111   : > { %3414 = vmatprep.subr.bf16.mxu1 %v3747_v35  ;;  %2095 = vmatmul.mubr.bf16.gmra.mxu0 %v706_v63  ;;  %v3767_v35 = vld [vmem:[%s5055_s7 + $0x2c0] sm:$0xff]   ;;  %v3771_v63 = vld [vmem:[%s5055_s7 + $0x3f8] sm:$0xff]  }
 0x112   : > { %2144 = vmatmul.mubr.bf16.gmra.mxu1 %v722_v53  ;;  %2184 = vmatprep.mubr.bf16.mxu0 %v737_v57  ;;  %v3772_v53 = vld [vmem:[%s5055_s7 + $0x338] sm:$0xff]   ;;  %v3775_v57 = vld [vmem:[%s5055_s7 + $0x3f0] sm:$0xff]  }
 0x113   : > { %2233 = vmatprep.mubr.bf16.mxu1 %v753_v3  ;;  %3387 = vmatpush3.bf16.msra.mxu0 %v3748_v10  ;;  %v3773_v10 = vld [vmem:[%s5055_s7 + $0x3b8] sm:$0xff]   ;;  %v5073_v3 = vpack.c.bf16 %v4284_v32, %v4274_v29  ;;  %v3777_v29 = vld [vmem:[%s5055_s7 + $0x3b0] sm:$0xff]   ;;  %v3778_v32 = vld [vmem:[%s5055_s7 + $0x368] sm:$0xff]  }
 0x114   : > { %3415 = vmatpush3.bf16.msra.mxu1 %v3749_v27  ;;  %3388 = vmatprep.subr.bf16.mxu0 %v3750_v19  ;;  %v3774_v27 = vld [vmem:[%s5055_s7 + $0x370] sm:$0xff]   ;;  %v5074_v19 = vpack.c.bf16 %v4296_v40, %v4288_v33  ;;  %v3779_v33 = vld [vmem:[%s5055_s7 + $0x3e8] sm:$0xff]  }
 0x115   : > { %3416 = vmatprep.subr.bf16.mxu1 %v3751_v20  ;;  %v5075_v20 = vpack.c.bf16 %v4306_v43, %v4300_v41  ;;  %v3780_v40 = vld [vmem:[%s5055_s7 + $0x328] sm:$0xff]   ;;  %v3782_v43 = vld [vmem:[%s5055_s7 + $0x360] sm:$0xff]  }
 0x116   : > { %v3781_v41 = vld [vmem:[%s5055_s7 + $0x3a8] sm:$0xff]  }
 0x117   : > { %3389 = vmatpush3.bf16.msra.mxu0 %v3752_v24  ;;  %v5076_v24 = vpack.c.bf16 %v4314_v45, %v4310_v44  ;;  %v3783_v44 = vld [vmem:[%s5055_s7 + $0x3e0] sm:$0xff]   ;;  %v5077_v45 = vpack.c.bf16 %v4330_v51, %v4326_v50 }
 0x118   : > { %3417 = vmatpush3.bf16.msra.mxu1 %v3753_v2  ;;  %3390 = vmatprep.subr.bf16.mxu0 %v3754_v4  ;;  %v3776_v2 = vld [vmem:[%s5055_s7 + $0x330] sm:$0xff]   ;;  %v5078_v4 = vpack.c.bf16 %v4350_v60, %v4344_v58  ;;  %v3784_v50 = vld [vmem:[%s5055_s7 + $0x320] sm:$0xff]   ;;  %v3786_v58 = vld [vmem:[%s5055_s7 + $0x358] sm:$0xff]  }
 0x119   : > { %3418 = vmatprep.subr.bf16.mxu1 %v3755_v17  ;;  %v5079_v17 = vpack.c.bf16 %v4356_v62, %v4353_v61  ;;  %v3785_v51 = vld [vmem:[%s5055_s7 + $0x3a0] sm:$0xff]   ;;  %v3787_v60 = vld [vmem:[%s5055_s7 + $0x3d8] sm:$0xff]   ;;  %v346_v61 = vld [vmem:[%s5054_s6 + $0x10] sm:$0xff] }
 0x11a   : > { %v3788_v62 = vld [vmem:[%s5055_s7 + $0x318] sm:$0xff]  }
 0x11b   : > { %3391 = vmatpush3.bf16.msra.mxu0 %v3756_v38  ;;  %v5080_v38 = vpack.c.bf16 %v4362_v5, %v4359_v0  ;;  %v3789_v0 = vld [vmem:[%s5055_s7 + $0x398] sm:$0xff]   ;;  %v3790_v5 = vld [vmem:[%s5055_s7 + $0x350] sm:$0xff]  }
 0x11c   : > { %3419 = vmatpush3.bf16.msra.mxu1 %v3757_v39  ;;  %3392 = vmatprep.subr.bf16.mxu0 %v3758_v34  ;;  %v340_v39 = vld [vmem:[%s5052_s4] sm:$0xff]  ;;  %v3791_v34 = vld [vmem:[%s5055_s7 + $0x3d0] sm:$0xff]  }
 0x11d   : > { %3420 = vmatprep.subr.bf16.mxu1 %v3759_v12  ;;  %2580 = vperm.xlu0 %3672, %v340_v39   ;;  %v3792_v12 = vld [vmem:[%s5055_s7 + $0x310] sm:$0xff]   ;;  %v3833_v39 = vld [vmem:[%s5056_s8] sm:$0xff]  }
 0x11f   : > { %3393 = vmatpush3.bf16.msra.mxu0 %v3760_v42  ;;  %v3793_v42 = vld [vmem:[%s5055_s7 + $0x390] sm:$0xff]  }
 0x120   : > { %3421 = vmatpush3.bf16.msra.mxu1 %v3761_v49  ;;  %3394 = vmatprep.subr.bf16.mxu0 %v3762_v55  ;;  %v3794_v49 = vld [vmem:[%s5055_s7 + $0x348] sm:$0xff]  }
 0x121   : > { %3422 = vmatprep.subr.bf16.mxu1 %v3763_v8  ;;  %2596 = vperm.xlu0 %3672, %v346_v61   ;;  %v3795_v55 = vld [vmem:[%s5055_s7 + $0x3c8] sm:$0xff]   ;;  %v5098_v61 = vld [vmem:[#allocation7_spill] sm:$0xff] }
 0x122   : > { %v3796_v8 = vld [vmem:[%s5055_s7 + $0x308] sm:$0xff]  }
 0x123   : > { %3395 = vmatpush3.bf16.msra.mxu0 %v3764_v13  ;;  %v3797_v13 = vld [vmem:[%s5055_s7 + $0x388] sm:$0xff]  }
 0x124   : > { %3423 = vmatpush3.bf16.msra.mxu1 %v3765_v56  ;;  %3396 = vmatprep.subr.bf16.mxu0 %v3766_v11  ;;  %v3798_v56 = vld [vmem:[%s5055_s7 + $0x340] sm:$0xff]  }
 0x125   : > { %3424 = vmatprep.subr.bf16.mxu1 %v3767_v35  ;;  %v3799_v11 = vld [vmem:[%s5055_s7 + $0x3c0] sm:$0xff]  }
 0x126   : > { %v3800_v35 = vld [vmem:[%s5055_s7 + $0x300] sm:$0xff]  }
 0x127   : > { %3397 = vmatpush3.bf16.msra.mxu0 %v3768_v21  ;;  %v3801_v21 = vld [vmem:[%s5055_s7 + $0x380] sm:$0xff]  }
 0x128   : > { %3425 = vmatpush3.bf16.msra.mxu1 %v3769_v36  ;;  %3438 = vmatprep.subr.bf16.mxu0 %v3770_v37  ;;  %v3802_v36 = vld [vmem:[%s5055_s7 + $0x478] sm:$0xff]  }
 0x129   : > { %3466 = vmatprep.subr.bf16.mxu1 %v3771_v63  ;;  %v3803_v37 = vld [vmem:[%s5055_s7 + $0x438] sm:$0xff]   ;;  %v3804_v63 = vld [vmem:[%s5055_s7 + $0x470] sm:$0xff]  }
 0x12a   : > { %2185 = vmatmul.mubr.bf16.vlgmr.msra.gmra.mxu0 %v5073_v3  ;;  %v3805_v3 = vld [vmem:[%s5055_s7 + $0x430] sm:$0xff]  }
 0x12b   : > { %2234 = vmatmul.mubr.bf16.vlgmr.msra.gmra.mxu1 %v5074_v19  ;;  %2192 = vmatprep.mubr.bf16.mxu0 %v5075_v20  ;;  %v5089_v19 = vmov 0.0   ;;  %v5090_v20 = vpack.c.bf16 %v4452_v25, %v4449_v23  ;;  %v3820_v23 = vld [vmem:[%s5056_s8 + $0x70] sm:$0xff]   ;;  %v3824_v25 = vld [vmem:[%s5056_s8 + $0x60] sm:$0xff]  }
 0x12c   : > { %2241 = vmatprep.mubr.bf16.mxu1 %v5076_v24  ;;  %3439 = vmatpush3.bf16.msra.mxu0 %v3772_v53  ;;  %v5081_v53 = vpack.c.bf16 %v4368_v16, %v4365_v9  ;;  %v3806_v9 = vld [vmem:[%s5055_s7 + $0x468] sm:$0xff]   ;;  %v5091_v24 = vpack.c.bf16 %v4460_v59, %v4455_v18  ;;  %v3821_v59 = vld [vmem:[%s5056_s8 + $0x30] sm:$0xff]  }
 0x12d   : > { %3467 = vmatpush3.bf16.msra.mxu1 %v3773_v10  ;;  %3440 = vmatprep.subr.bf16.mxu0 %v3774_v27  ;;  %v5082_v10 = vpack.c.bf16 %v4394_v28, %v4381_v22  ;;  %v5083_v27 = vpack.c.bf16 %v4400_v31, %v4397_v30  ;;  %v3807_v16 = vld [vmem:[%s5055_s7 + $0x428] sm:$0xff]   ;;  %v3808_v22 = vld [vmem:[%s5055_s7 + $0x460] sm:$0xff]   ;;  %v5085_v28 = vpack.c.bf16 %v4414_v14, %v4411_v15  ;;  %v3810_v14 = vld [vmem:[%s5055_s7 + $0x458] sm:$0xff]  }
 0x12e   : > { %3468 = vmatprep.subr.bf16.mxu1 %v3775_v57  ;;  %v5084_v57 = vpack.c.bf16 %v4406_v48, %v4403_v47  ;;  %v5086_v30 = vpack.c.bf16 %v4430_v26, %v4417_v1  ;;  %v5087_v31 = vpack.c.bf16 %v4444_v46, %v4441_v54  ;;  %v5088_v47 = vpack.c.bf16 %v4036_v7, %v4033_v6  ;;  %v3809_v48 = vld [vmem:[%s5055_s7 + $0x420] sm:$0xff]   ;;  %v3811_v1 = vld [vmem:[%s5055_s7 + $0x418] sm:$0xff]   ;;  %v3812_v6 = vld [vmem:[%s5055_s7 + $0x450] sm:$0xff]  }
 0x12f   : > { %v3813_v7 = vld [vmem:[%s5055_s7 + $0x410] sm:$0xff]   ;;  %v3814_v15 = vld [vmem:[%s5055_s7 + $0x448] sm:$0xff]   ;;  %v3816_v54 = vld [vmem:[%s5055_s7 + $0x440] sm:$0xff]  }
 0x130   : > { %3441 = vmatpush3.bf16.msra.mxu0 %v3776_v2  ;;  %v3815_v26 = vld [vmem:[%s5055_s7 + $0x408] sm:$0xff]   ;;  %v3817_v46 = vld [vmem:[%s5055_s7 + $0x400] sm:$0xff]  }
 0x131   : > { %3469 = vmatpush3.bf16.msra.mxu1 %v3777_v29  ;;  %3442 = vmatprep.subr.bf16.mxu0 %v3778_v32  ;;  %v5092_v2 = vld [vmem:[#allocation9_spill] sm:$0xff]  ;;  %v3818_v32 = vld [vmem:[%s5056_s8 + $0x78] sm:$0xff]   ;;  %v3822_v18 = vld [vmem:[%s5056_s8 + $0x68] sm:$0xff]  }
 0x132   : > { %3470 = vmatprep.subr.bf16.mxu1 %v3779_v33  ;;  %2193 = vmatmul.mubr.bf16.gmra.mxu0 %v5077_v45  ;;  %v5093_v29 = vpack.c.bf16 %v4466_v52, %v5092_v2  ;;  %v3819_v33 = vld [vmem:[%s5056_s8 + $0x38] sm:$0xff]   ;;  %v3823_v52 = vld [vmem:[%s5056_s8 + $0x28] sm:$0xff]   ;;  %v3829_v45 = vld [vmem:[%s5056_s8 + $0x10] sm:$0xff]  }
 0x133   : > { %2242 = vmatmul.mubr.bf16.gmra.mxu1 %v5078_v4  ;;  %2282 = vmatprep.mubr.bf16.mxu0 %v5079_v17  ;;  %v3830_v4 = vld [vmem:[%s5056_s8 + $0x48] sm:$0xff]  }
 0x134   : > { %2331 = vmatprep.mubr.bf16.mxu1 %v5080_v38  ;;  %3443 = vmatpush3.bf16.msra.mxu0 %v3780_v40  ;;  %v3825_v40 = vld [vmem:[%s5056_s8 + $0x20] sm:$0xff]   ;;  %v3831_v17 = vld [vmem:[%s5056_s8 + $0x8] sm:$0xff]  }
 0x135   : > { %3471 = vmatpush3.bf16.msra.mxu1 %v3781_v41  ;;  %3444 = vmatprep.subr.bf16.mxu0 %v3782_v43  ;;  %v3826_v41 = vld [vmem:[%s5056_s8 + $0x58] sm:$0xff]   ;;  %v3832_v38 = vld [vmem:[%s5056_s8 + $0x40] sm:$0xff]  }
 0x136   : > { %3472 = vmatprep.subr.bf16.mxu1 %v3783_v44  ;;  %v3827_v43 = vld [vmem:[%s5056_s8 + $0x18] sm:$0xff]   ;;  %v3828_v44 = vld [vmem:[%s5056_s8 + $0x50] sm:$0xff]  }
 0x138   : > { %3445 = vmatpush3.bf16.msra.mxu0 %v3784_v50  ;;  %v5094_v50 = vld [vmem:[#allocation6_spill] sm:$0xff] }
 0x139   : > { %3473 = vmatpush3.bf16.msra.mxu1 %v3785_v51  ;;  %3446 = vmatprep.subr.bf16.mxu0 %v3786_v58  ;;  %v5095_v51 = vld [vmem:[#allocation5_spill] sm:$0xff] }
 0x13a   : > { %3474 = vmatprep.subr.bf16.mxu1 %v3787_v60  ;;  %v5096_v58 = vpack.c.bf16 %v5094_v50, %v5095_v51  ;;  %v5097_v60 = vld [vmem:[#allocation8_spill] sm:$0xff] }
 0x13c   : > { %3447 = vmatpush3.bf16.msra.mxu0 %v3788_v62  ;;  %v5099_v62 = vpack.c.bf16 %v5097_v60, %v5098_v61 }
 0x13d   : > { %3475 = vmatpush3.bf16.msra.mxu1 %v3789_v0  ;;  %3448 = vmatprep.subr.bf16.mxu0 %v3790_v5  ;;  %v3834_v5 = vld [vmem:[%s4027_s29 + $0x20] sm:$0xff] }
 0x13e   : > { %3476 = vmatprep.subr.bf16.mxu1 %v3791_v34  ;;  %v3835_v34 = vld [vmem:[%s4027_s29 + $0x30] sm:$0xff]  ;;  %s4949_s29 = scalar_lea.vmem [#allocation2], %s3077_s24  ;;  %s3842_s24 = scalar_lea.vmem %s3841_s22, 2048 }
 0x13f   : > { %s3011_s27 = sshll.u32 %s4949_s29, 4  ;;  %s5000_s27 = int_to_ptr.vmem [resolvable:$true] %s3011_s27 }
 0x140   : > { %3449 = vmatpush3.bf16.msra.mxu0 %v3792_v12  ;;  %v2399_v12 = vpack.c.bf16 %v3835_v34, %v3834_v5  ;;  %s3836_s17 = scalar_lea.vmem %s5000_s27, 1024  ;;  %p3843_p0 = scmp.lt.s32.totalorder %s5000_s27, %s3841_s22 }
 0x141   : > { %3477 = vmatpush3.bf16.msra.mxu1 %v3793_v42  ;;  %3450 = vmatprep.subr.bf16.mxu0 %v3794_v49  ;;  %p3837_p11 = scmp.ne.s32.totalorder %s5000_s27, %s3836_s17  ;;  %p3844_p1 = scmp.lt.s32.totalorder %s3842_s24, %s3836_s17 }
 0x142   : > { %3478 = vmatprep.subr.bf16.mxu1 %v3795_v55 }
 0x143   : > { %p3838_p12 = pnand %p3837_p11, %p4001_p5  ;;  %p3845_p2 = por %p3844_p1, %p3843_p0 }
 0x144   : > { %3451 = vmatpush3.bf16.msra.mxu0 %v3796_v8 }
 0x145   : > { %3479 = vmatpush3.bf16.msra.mxu1 %v3797_v13  ;;  %3452 = vmatprep.subr.bf16.mxu0 %v3798_v56  ;;  %p3839_p13 = pneg %p3838_p12 }
 0x146   : > { %3480 = vmatprep.subr.bf16.mxu1 %v3799_v11 }
 0x147   : > { %p3846_p3 = pnand %p3845_p2, %p3839_p13 }
 0x148   : > { %3453 = vmatpush3.bf16.msra.mxu0 %v3800_v35 }
 0x149   : > { %3481 = vmatpush3.bf16.msra.mxu1 %v3801_v21  ;;  %3494 = vmatprep.subr.bf16.mxu0 %v3802_v36 }
 0x14a   : > { %3522 = vmatprep.subr.bf16.mxu1 %v3818_v32 }
 0x14b   : > { %2283 = vmatmul.mubr.bf16.vlgmr.msra.gmra.mxu0 %v5081_v53 }
 0x14c   : > { %2332 = vmatmul.mubr.bf16.vlgmr.msra.gmra.mxu1 %v5082_v10  ;;  %2290 = vmatprep.mubr.bf16.mxu0 %v5083_v27  ;;  %v345_v10 = vld [vmem:[%s5054_s6 + $0x8] sm:$0xff] }
 0x14d   : > { %2339 = vmatprep.mubr.bf16.mxu1 %v5084_v57  ;;  %3495 = vmatpush3.bf16.msra.mxu0 %v3803_v37  ;;  %v344_v37 = vld [vmem:[%s5054_s6] sm:$0xff] }
 0x14e   : > { %3496 = vmatprep.subr.bf16.mxu0 %v3804_v63  ;;  %3523 = vmatpush3.bf16.msra.mxu1 %v3819_v33 }
 0x14f   : > { %3524 = vmatprep.subr.bf16.mxu1 %v3820_v23  ;;  %2586 = vperm.xlu1 %3673, %v344_v37  }
 0x151   : > { %3497 = vmatpush3.bf16.msra.mxu0 %v3805_v3 }
 0x152   : > { %3498 = vmatprep.subr.bf16.mxu0 %v3806_v9  ;;  %3525 = vmatpush3.bf16.msra.mxu1 %v3821_v59 }
 0x153   : > { %2291 = vmatmul.mubr.bf16.gmra.mxu0 %v5085_v28  ;;  %3526 = vmatprep.subr.bf16.mxu1 %v3822_v18 }
 0x154   : > { %2340 = vmatmul.mubr.bf16.gmra.mxu1 %v5086_v30  ;;  %2380 = vmatprep.mubr.bf16.mxu0 %v5087_v31 }
 0x155   : > { %2561 = vmatprep.mubr.bf16.mxu1 %v5088_v47  ;;  %3499 = vmatpush3.bf16.msra.mxu0 %v3807_v16 }
 0x156   : > { %3500 = vmatprep.subr.bf16.mxu0 %v3808_v22  ;;  %3527 = vmatpush3.bf16.msra.mxu1 %v3823_v52 }
 0x157   : > { %3528 = vmatprep.subr.bf16.mxu1 %v3824_v25  ;;  %2591 = vperm.xlu1 %3673, %v345_v10  }
 0x159   : > { %3501 = vmatpush3.bf16.msra.mxu0 %v3809_v48 }
 0x15a   : > { %3502 = vmatprep.subr.bf16.mxu0 %v3810_v14  ;;  %3529 = vmatpush3.bf16.msra.mxu1 %v3825_v40 }
 0x15b   : > { %3530 = vmatprep.subr.bf16.mxu1 %v3826_v41 }
 0x15d   : > { %3503 = vmatpush3.bf16.msra.mxu0 %v3811_v1 }
 0x15e   : > { %3504 = vmatprep.subr.bf16.mxu0 %v3812_v6  ;;  %3531 = vmatpush3.bf16.msra.mxu1 %v3827_v43 }
 0x15f   : > { %3532 = vmatprep.subr.bf16.mxu1 %v3828_v44 }
 0x161   : > { %3505 = vmatpush3.bf16.msra.mxu0 %v3813_v7 }
 0x162   : > { %3506 = vmatprep.subr.bf16.mxu0 %v3814_v15  ;;  %3533 = vmatpush3.bf16.msra.mxu1 %v3829_v45 }
 0x163   : > { %3534 = vmatprep.subr.bf16.mxu1 %v3830_v4 }
 0x165   : > { %3507 = vmatpush3.bf16.msra.mxu0 %v3815_v26 }
 0x166   : > { %3508 = vmatprep.subr.bf16.mxu0 %v3816_v54  ;;  %3535 = vmatpush3.bf16.msra.mxu1 %v3831_v17 }
 0x167   : > { %3536 = vmatprep.subr.bf16.mxu1 %v3832_v38 }
 0x169   : > { %3509 = vmatpush3.bf16.msra.mxu0 %v3817_v46 }
 0x16a   : > { %3566 = vmatprep.subr.mxu0 %v5089_v19  ;;  %3537 = vmatpush3.bf16.msra.mxu1 %v3833_v39 }
 0x16b   : > { %3577 = vmatprep.subr.mxu1 %v5089_v19 }
 0x16c   : > { %2381 = vmatmul.mubr.bf16.vlgmr.msra.gmra.mxu0 %v5090_v20 }
 0x16d   : > { %2388 = vmatprep.mubr.bf16.mxu0 %v5091_v24  ;;  %2562 = vmatmul.mubr.bf16.vlgmr.msra.gmra.mxu1 %v5096_v58 }
 0x16e   : > { %2569 = vmatprep.mubr.bf16.mxu1 %v5099_v62 }
 0x174   : > { %2389 = vmatmul.mubr.bf16.gmra.mxu0 %v5093_v29 }
 0x175   : > { %3568 = vmatprep.mubr.msk.f32.mxu0 %vm3908_vm1, %v5089_v19  ;;  %2570 = vmatmul.mubr.bf16.gmra.mxu1 %v2399_v12 }
 0x176   : > { %3579 = vmatprep.mubr.msk.f32.mxu1 %vm3908_vm1, %v5089_v19 }
 0x1a9   : > { %v3286_v0 = vpop.f32.mrf.mxu0 }
 0x1aa   : > { %v3314_v55 = vpop.f32.mrf.mxu1 }
 0x1ab   : > { %v3287_v42 = vpop.f32.mrf.mxu0 }
 0x1ac   : > { %v3315_v13 = vpop.f32.mrf.mxu1  ;;  %v3288_v39 = vadd.f32 %v3287_v42, %v3286_v0 }
 0x1ad   : > { %v3289_v49 = vpop.f32.mrf.mxu0  ;;  %v3316_v50 = vadd.f32 %v3315_v13, %v3314_v55 }
 0x1ae   : > { %v3317_v11 = vpop.f32.mrf.mxu1 }
 0x1af   : > { %v3290_v8 = vpop.f32.mrf.mxu0  ;;  %v2040_v5 = vadd.f32 %v3316_v50, %v3288_v39  ;;  %v2581_v50 = vpop.permute.xlu0 %2580 }
 0x1b0   : > { %v3318_v21 = vpop.f32.mrf.mxu1  ;;  %v3291_v61 = vadd.f32 %v3290_v8, %v3289_v49 }
 0x1b1   : > { %v3292_v56 = vpop.f32.mrf.mxu0  ;;  %v3319_v62 = vadd.f32 %v3318_v21, %v3317_v11 }
 0x1b2   : > { %v3320_v63 = vpop.f32.mrf.mxu1 }
 0x1b3   : > { %v3293_v35 = vpop.f32.mrf.mxu0  ;;  %v2043_v19 = vadd.f32 %v3319_v62, %v3291_v61 }
 0x1b4   : > { %v3321_v57 = vpop.f32.mrf.mxu1 }
 0x1b5   : > { %v4876_v36 = vpop.f32.mrf.mxu0 }
 0x1b6   : > { %5100 = vst [vmem:[#allocation9_spill] sm:$0xff] %v4876_v36  ;;  %v3323_v9 = vpop.f32.mrf.mxu1 }
 0x1b7   : > { %v4881_v53 = vpop.f32.mrf.mxu0 }
 0x1b8   : > { %5101 = vst [vmem:[#allocation6_spill] sm:$0xff] %v4881_v53  ;;  %v3324_v22 = vpop.f32.mrf.mxu1 }
 0x1b9   : > { %v3325_v49 = vadd.f32 %v3324_v22, %v3323_v9 }
 0x1bd   : > { %v5107_v55 = vld [vmem:[#allocation9_spill] sm:$0xff] }
 0x1bf   : > { %v5108_v13 = vld [vmem:[#allocation6_spill] sm:$0xff] }
 0x1c9   : > { %v3342_v27 = vpop.f32.mrf.mxu0 }
 0x1ca   : > { %v3370_v28 = vpop.f32.mrf.mxu1 }
 0x1cb   : > { %v3343_v3 = vpop.f32.mrf.mxu0 }
 0x1cc   : > { %v3371_v31 = vpop.f32.mrf.mxu1  ;;  %v3344_v60 = vadd.f32 %v3343_v3, %v3342_v27  ;;  %v3297_v27 = vadd.f32 %v5108_v13, %v5107_v55 }
 0x1cd   : > { %v3345_v16 = vpop.f32.mrf.mxu0 }
 0x1ce   : > { %v3373_v48 = vpop.f32.mrf.mxu1  ;;  %v2089_v10 = vadd.f32 %v3344_v60, %v2040_v5 }
 0x1cf   : > { %v3346_v30 = vpop.f32.mrf.mxu0 }
 0x1d0   : > { %v3374_v1 = vpop.f32.mrf.mxu1  ;;  %v3347_v34 = vadd.f32 %v3346_v30, %v3345_v16 }
 0x1d1   : > { %v3348_v47 = vpop.f32.mrf.mxu0  ;;  %v3375_v8 = vadd.f32 %v3374_v1, %v3373_v48 }
 0x1d2   : > { %v3376_v7 = vpop.f32.mrf.mxu1  ;;  %v2092_v53 = vadd.f32 %v3347_v34, %v2043_v19  ;;  %v2051_v19 = vadd.f32 %v3325_v49, %v3297_v27  ;;  %v5114_v49 = vmov 0.0  }
 0x1d3   : > { %v3349_v14 = vpop.f32.mrf.mxu0 }
 0x1d4   : > { %v3377_v54 = vpop.f32.mrf.mxu1  ;;  %v3350_v42 = vadd.f32 %v3349_v14, %v3348_v47  ;;  %v2141_v16 = vadd.f32 %v3375_v8, %v2092_v53 }
 0x1d5   : > { %v3351_v6 = vpop.f32.mrf.mxu0 }
 0x1d6   : > { %v4886_v20 = vpop.f32.mrf.mxu1 }
 0x1d7   : > { %v3352_v15 = vpop.f32.mrf.mxu0  ;;  %5102 = vst [vmem:[#allocation5_spill] sm:$0xff] %v4886_v20  ;;  %v3372_v20 = vadd.f32 %v3371_v31, %v3370_v28  ;;  %v3378_v31 = vadd.f32 %v3377_v54, %v3376_v7 }
 0x1d8   : > { %v4888_v2 = vpop.f32.mrf.mxu1  ;;  %v3353_v30 = vadd.f32 %v3352_v15, %v3351_v6 }
 0x1d9   : > { %5103 = vst [vmem:[#allocation8_spill] sm:$0xff] %v4888_v2  ;;  %v3322_v2 = vadd.f32 %v3321_v57, %v3320_v63  ;;  %v2138_v0 = vadd.f32 %v3372_v20, %v2089_v10 }
 0x1da   : > { %v2100_v14 = vadd.f32 %v3353_v30, %v2051_v19 }
 0x1e0   : > { %v5110_v53 = vld [vmem:[#allocation8_spill] sm:$0xff] }
 0x1ea   : > { %v3398_v26 = vpop.f32.mrf.mxu0 }
 0x1eb   : > { %v3426_v29 = vpop.f32.mrf.mxu1 }
 0x1ec   : > { %v3399_v46 = vpop.f32.mrf.mxu0 }
 0x1ed   : > { %v3427_v33 = vpop.f32.mrf.mxu1 }
 0x1ee   : > { %v3401_v24 = vpop.f32.mrf.mxu0  ;;  %v3428_v63 = vadd.f32 %v3427_v33, %v3426_v29 }
 0x1ef   : > { %v3429_v59 = vpop.f32.mrf.mxu1 }
 0x1f0   : > { %v3402_v32 = vpop.f32.mrf.mxu0 }
 0x1f1   : > { %v3430_v52 = vpop.f32.mrf.mxu1  ;;  %v3403_v11 = vadd.f32 %v3402_v32, %v3401_v24  ;;  %v5109_v24 = vld [vmem:[#allocation5_spill] sm:$0xff] }
 0x1f2   : > { %v3404_v23 = vpop.f32.mrf.mxu0  ;;  %v3381_v6 = vadd.f32 %v5110_v53, %v5109_v24 }
 0x1f3   : > { %v4890_v40 = vpop.f32.mrf.mxu1  ;;  %v2190_v28 = vadd.f32 %v3403_v11, %v2141_v16  ;;  %v342_v16 = vld [vmem:[%s5053_s5 + $0x8] sm:$0xff] }
 0x1f4   : > { %v3405_v18 = vpop.f32.mrf.mxu0  ;;  %5104 = vst [vmem:[#allocation7_spill] sm:$0xff] %v4890_v40  ;;  %v3294_v40 = vadd.f32 %v3293_v35, %v3292_v56 }
 0x1f5   : > { %v3433_v44 = vpop.f32.mrf.mxu1  ;;  %v3406_v47 = vadd.f32 %v3405_v18, %v3404_v23 }
 0x1f6   : > { %v3407_v25 = vpop.f32.mrf.mxu0  ;;  %v2048_v21 = vadd.f32 %v3322_v2, %v3294_v40  ;;  %v2149_v40 = vadd.f32 %v3381_v6, %v2100_v14 }
 0x1f7   : > { %v4892_v4 = vpop.f32.mrf.mxu1 }
 0x1f8   : > { %v3408_v41 = vpop.f32.mrf.mxu0  ;;  %5105 = vst [vmem:[#allocation10_spill] sm:$0xff] %v4892_v4  ;;  %v3400_v4 = vadd.f32 %v3399_v46, %v3398_v26  ;;  %v2097_v35 = vadd.f32 %v3350_v42, %v2048_v21  ;;  %v3431_v46 = vadd.f32 %v3430_v52, %v3429_v59 }
 0x1f9   : > { %v4894_v38 = vpop.f32.mrf.mxu1  ;;  %v3409_v29 = vadd.f32 %v3408_v41, %v3407_v25 }
 0x1fa   : > { %5106 = vst [vmem:[#allocation11_spill] sm:$0xff] %v4894_v38  ;;  %v2187_v3 = vadd.f32 %v3400_v4, %v2138_v0  ;;  %v2146_v48 = vadd.f32 %v3378_v31, %v2097_v35  ;;  %v2239_v15 = vadd.f32 %v3431_v46, %v2190_v28  ;;  %v343_v28 = vld [vmem:[%s5053_s5 + $0x10] sm:$0xff] }
 0x1fb   : > { %v5111_v23 = vld [vmem:[#allocation7_spill] sm:$0xff]  ;;  %v2198_v60 = vadd.f32 %v3409_v29, %v2149_v40  ;;  %v2587_v29 = vpop.permute.xlu1 %2586 }
 0x1fc   : > { %v2236_v26 = vadd.f32 %v3428_v63, %v2187_v3  ;;  %v2195_v32 = vadd.f32 %v3406_v47, %v2146_v48  ;;  %v3434_v18 = vadd.f32 %v3433_v44, %v5111_v23  ;;  %v341_v44 = vld [vmem:[%s5053_s5] sm:$0xff] }
 0x1ff   : > { %v5112_v62 = vld [vmem:[#allocation10_spill] sm:$0xff] }
 0x201   : > { %v5113_v5 = vld [vmem:[#allocation11_spill] sm:$0xff] }
 0x202   : > { %v3437_v34 = vadd.f32 %v5113_v5, %v5112_v62 }
 0x20b   : > { %v3454_v43 = vpop.f32.mrf.mxu0 }
 0x20c   : > { %v3482_v51 = vpop.f32.mrf.mxu1 }
 0x20d   : > { %v3455_v45 = vpop.f32.mrf.mxu0 }
 0x20e   : > { %v3483_v12 = vpop.f32.mrf.mxu1  ;;  %v3456_v57 = vadd.f32 %v3455_v45, %v3454_v43 }
 0x20f   : > { %v3457_v17 = vpop.f32.mrf.mxu0  ;;  %v3484_v33 = vadd.f32 %v3483_v12, %v3482_v51 }
 0x210   : > { %v3485_v36 = vpop.f32.mrf.mxu1  ;;  %v2285_v1 = vadd.f32 %v3456_v57, %v2236_v26 }
 0x211   : > { %v3458_v58 = vpop.f32.mrf.mxu0 }
 0x212   : > { %v3486_v39 = vpop.f32.mrf.mxu1  ;;  %v3459_v20 = vadd.f32 %v3458_v58, %v3457_v17  ;;  %v2334_v59 = vadd.f32 %v3484_v33, %v2285_v1  ;;  %v2244_v58 = vadd.f32 %v3434_v18, %v2195_v32  ;;  %v2592_v18 = vpop.permute.xlu1 %2591 }
 0x213   : > { %v3460_v37 = vpop.f32.mrf.mxu0  ;;  %v3487_v4 = vadd.f32 %v3486_v39, %v3485_v36 }
 0x214   : > { %v3488_v9 = vpop.f32.mrf.mxu1  ;;  %v2288_v43 = vadd.f32 %v3459_v20, %v2239_v15 }
 0x215   : > { %v3461_v38 = vpop.f32.mrf.mxu0 }
 0x216   : > { %v3489_v7 = vpop.f32.mrf.mxu1  ;;  %v3462_v52 = vadd.f32 %v3461_v38, %v3460_v37  ;;  %v2337_v25 = vadd.f32 %v3487_v4, %v2288_v43  ;;  %v2247_v38 = vadd.f32 %v3437_v34, %v2198_v60 }
 0x217   : > { %v3463_v56 = vpop.f32.mrf.mxu0  ;;  %v3490_v37 = vadd.f32 %v3489_v7, %v3488_v9 }
 0x218   : > { %v3491_v41 = vpop.f32.mrf.mxu1  ;;  %v2293_v12 = vadd.f32 %v3462_v52, %v2244_v58 }
 0x219   : > { %v3464_v22 = vpop.f32.mrf.mxu0 }
 0x21a   : > { %v3465_v10 = vadd.f32 %v3464_v22, %v3463_v56  ;;  %v3492_v13 = vpop.f32.mrf.mxu1  ;;  %v2342_v8 = vadd.f32 %v3490_v37, %v2293_v12 }
 0x21b   : > { %v3493_v39 = vadd.f32 %v3492_v13, %v3491_v41 }
 0x21c   : > { %v2296_v11 = vadd.f32 %v3465_v10, %v2247_v38 }
 0x21e   : > { %v2345_v63 = vadd.f32 %v3493_v39, %v2296_v11 }
 0x22c   : > { %v3510_v2 = vpop.f32.mrf.mxu0 }
 0x22d   : > { %v3538_v47 = vpop.f32.mrf.mxu1 }
 0x22e   : > { %v3511_v54 = vpop.f32.mrf.mxu0 }
 0x22f   : > { %v3512_v45 = vadd.f32 %v3511_v54, %v3510_v2  ;;  %v3539_v14 = vpop.f32.mrf.mxu1  ;;  %v4956_v2 = vpop.permute.xlu0 %2596 }
 0x230   : > { %v3513_v17 = vpop.f32.mrf.mxu0  ;;  %v3540_v46 = vadd.f32 %v3539_v14, %v3538_v47 }
 0x231   : > { %v2383_v61 = vadd.f32 %v3512_v45, %v2334_v59  ;;  %v3541_v20 = vpop.f32.mrf.mxu1 }
 0x232   : > { %v3514_v51 = vpop.f32.mrf.mxu0  ;;  %v2695_v9 = vmax.f32 %v3540_v46, 0.0 }
 0x233   : > { %v2583_v0 = vadd.f32 %v2581_v50, %v2383_v61  ;;  %v3515_v42 = vadd.f32 %v3514_v51, %v3513_v17  ;;  %v3542_v22 = vpop.f32.mrf.mxu1 }
 0x234   : > { %v3516_v36 = vpop.f32.mrf.mxu0  ;;  %2696 = vst.msk [vmem:[%s4949_s29 + $0x30] sm:$0xff] %vm2691_vm2, %v2695_v9  ;;  %v3543_v48 = vadd.f32 %v3542_v22, %v3541_v20 }
 0x235   : > { %v2386_v55 = vadd.f32 %v3515_v42, %v2337_v25  ;;  %3567 = vmatpush3.msra.mxu0 %v2583_v0  ;;  %v3544_v24 = vpop.f32.mrf.mxu1 }
 0x236   : > { %v3517_v27 = vpop.f32.mrf.mxu0  ;;  %3569 = vmatmul.mubr.msk.f32.vlgmr.msra.gmra.mxu0 %vm354_vm0, %v341_v44  ;;  %3588 = vmatprep.subr.mxu0 %v5114_v49  ;;  %v2797_v1 = vmax.f32 %v3543_v48, 0.0 }
 0x237   : > { %v2697_v21 = vadd.f32 %v2581_v50, %v2386_v55  ;;  %v3518_v3 = vadd.f32 %v3517_v27, %v3516_v36  ;;  %3571 = vmatprep.mubr.msk.f32.mxu0 %vm3908_vm1, %v5114_v49  ;;  %v3545_v53 = vpop.f32.mrf.mxu1 }
 0x238   : > { %v3519_v30 = vpop.f32.mrf.mxu0  ;;  %v3546_v6 = vadd.f32 %v3545_v53, %v3544_v24  ;;  %2799 = vrot.lane.b32.xlu0 %v2797_v1, %s3909_s25 }
 0x239   : > { %v2391_v56 = vadd.f32 %v3518_v3, %v2342_v8  ;;  %3578 = vmatpush3.msra.mxu1 %v2697_v21  ;;  %v3547_v33 = vpop.f32.mrf.mxu1 }
 0x23a   : > { %v3520_v35 = vpop.f32.mrf.mxu0  ;;  %3572 = vmatmul.mubr.msk.f32.gmra.mxu0 %vm354_vm0, %v342_v16  ;;  %3580 = vmatmul.mubr.msk.f32.vlgmr.msra.gmra.mxu1 %vm354_vm0, %v341_v44  ;;  %v2890_v15 = vmax.f32 %v3546_v6, 0.0 }
 0x23b   : > { %v2803_v57 = vadd.f32 %v2581_v50, %v2391_v56  ;;  %v3521_v19 = vadd.f32 %v3520_v35, %v3519_v30  ;;  %3574 = vmatprep.mubr.msk.f32.mxu0 %vm3908_vm1, %v5114_v49  ;;  %3582 = vmatprep.mubr.msk.f32.mxu1 %vm3908_vm1, %v5114_v49  ;;  %v3548_v7 = vpop.f32.mrf.mxu1 }
 0x23c   : > { %3599 = vmatprep.subr.mxu1 %v5114_v49  ;;  %2891 = vst.msk [vmem:[%s4949_s29 + $0x38] sm:$0xff] %vm2691_vm2, %v2890_v15 }
 0x23d   : > { %v2394_v31 = vadd.f32 %v3521_v19, %v2345_v63  ;;  %3589 = vmatpush3.msra.mxu0 %v2803_v57  ;;  %v3549_v19 = vadd.f32 %v3548_v7, %v3547_v33 }
 0x23e   : > { %3575 = vmatmul.mubr.msk.f32.gmra.mxu0 %vm354_vm0, %v343_v28  ;;  %3583 = vmatmul.mubr.msk.f32.gmra.mxu1 %vm354_vm0, %v342_v16 }
 0x23f   : > { %v2892_v26 = vadd.f32 %v2581_v50, %v2394_v31  ;;  %3585 = vmatprep.mubr.msk.f32.mxu1 %vm3908_vm1, %v5114_v49  ;;  %3590 = vmatprep.mubr.msk.f32.mxu0 %vm3908_vm1, %v5114_v49  ;;  %v2991_v46 = vmax.f32 %v3549_v19, 0.0 }
 0x241   : > { %3600 = vmatpush3.msra.mxu1 %v2892_v26 }
 0x242   : > { %3586 = vmatmul.mubr.msk.f32.gmra.mxu1 %vm354_vm0, %v343_v28  ;;  %3591 = vmatmul.mubr.msk.f32.vlgmr.msra.gmra.mxu0 %vm354_vm0, %v341_v44 }
 0x243   : > { %3593 = vmatprep.mubr.msk.f32.mxu0 %vm3908_vm1, %v5114_v49  ;;  %3601 = vmatprep.mubr.msk.f32.mxu1 %vm3908_vm1, %v5114_v49 }
 0x246   : > { %3594 = vmatmul.mubr.msk.f32.gmra.mxu0 %vm354_vm0, %v342_v16  ;;  %3602 = vmatmul.mubr.msk.f32.vlgmr.msra.gmra.mxu1 %vm354_vm0, %v341_v44 }
 0x247   : > { %3596 = vmatprep.mubr.msk.f32.mxu0 %vm3908_vm1, %v5114_v49  ;;  %3604 = vmatprep.mubr.msk.f32.mxu1 %vm3908_vm1, %v5114_v49 }
 0x24a   : > { %3597 = vmatmul.mubr.msk.f32.gmra.mxu0 %vm354_vm0, %v343_v28  ;;  %3605 = vmatmul.mubr.msk.f32.gmra.mxu1 %vm354_vm0, %v342_v16 }
 0x24b   : > { %3607 = vmatprep.mubr.msk.f32.mxu1 %vm3908_vm1, %v5114_v49 }
 0x24e   : > { %3608 = vmatmul.mubr.msk.f32.gmra.mxu1 %vm354_vm0, %v343_v28 }
 0x2aa   : > { %v2800_v32 = vpop.permute.xlu0 %2799 }
 0x2ab   : > { %2802 = vst.msk [vmem:[%s4949_s29 + $0x30] sm:$0xff] %vm2793_vm3, %v2800_v32 }
 0x2f6   : > { %v2674_v40 = vpop.f32.mrf.mxu0 }
 0x2f7   : > { %v2675_v43 = vadd.f32 %v2674_v40, %v2587_v29 }
 0x2f8   : > { %v3570_v54 = vpop.f32.mrf.mxu0 }
 0x2f9   : > { %v2688_v23 = vmax.f32 %v2675_v43, 0.0 }
 0x2fa   : > { %v2679_v59 = vpop.f32.mrf.mxu0  ;;  %v2764_v52 = vpop.f32.mrf.mxu1 }
 0x2fb   : > { %2692 = vst.msk [vmem:[%s4949_s29] sm:$0xff] %vm2691_vm2, %v2688_v23  ;;  %v2765_v45 = vadd.f32 %v2764_v52, %v2587_v29  ;;  %v2680_v4 = vadd.f32 %v2679_v59, %v2592_v18 }
 0x2fc   : > { %v3573_v17 = vpop.f32.mrf.mxu0  ;;  %v3581_v50 = vpop.f32.mrf.mxu1 }
 0x2fd   : > { %v2778_v58 = vmax.f32 %v2765_v45, 0.0  ;;  %v2689_v60 = vmax.f32 %v2680_v4, 0.0 }
 0x2fe   : > { %v2684_v61 = vpop.f32.mrf.mxu0  ;;  %v2769_v62 = vpop.f32.mrf.mxu1 }
 0x2ff   : > { %v2685_v5 = vadd.f32 %v2684_v61, %v4956_v2  ;;  %2784 = vrot.lane.b32.xlu1 %v2778_v58, %s3909_s25  ;;  %2693 = vst.msk [vmem:[%s4949_s29 + $0x10] sm:$0xff] %vm2691_vm2, %v2689_v60  ;;  %v2770_v34 = vadd.f32 %v2769_v62, %v2592_v18 }
 0x300   : > { %v3576_v25 = vpop.f32.mrf.mxu0  ;;  %v3584_v41 = vpop.f32.mrf.mxu1 }
 0x301   : > { %v2690_v51 = vmax.f32 %v2685_v5, 0.0  ;;  %v2779_v12 = vmax.f32 %v2770_v34, 0.0 }
 0x302   : > { %v2774_v10 = vpop.f32.mrf.mxu1  ;;  %v2870_v0 = vpop.f32.mrf.mxu0 }
 0x303   : > { %2694 = vst.msk [vmem:[%s4949_s29 + $0x20] sm:$0xff] %vm2691_vm2, %v2690_v51  ;;  %v2775_v42 = vadd.f32 %v2774_v10, %v4956_v2  ;;  %v2871_v44 = vadd.f32 %v2870_v0, %v2587_v29  ;;  %2786 = vrot.lane.b32.xlu0 %v2779_v12, %s3909_s25 }
 0x304   : > { %v3587_v36 = vpop.f32.mrf.mxu1  ;;  %v3592_v38 = vpop.f32.mrf.mxu0 }
 0x305   : > { %v2780_v37 = vmax.f32 %v2775_v42, 0.0  ;;  %v2884_v55 = vmax.f32 %v2871_v44, 0.0 }
 0x306   : > { %v2875_v13 = vpop.f32.mrf.mxu0  ;;  %v2959_v27 = vpop.f32.mrf.mxu1 }
 0x307   : > { %2887 = vst.msk [vmem:[%s4949_s29 + $0x8] sm:$0xff] %vm2691_vm2, %v2884_v55  ;;  %v2876_v49 = vadd.f32 %v2875_v13, %v2592_v18  ;;  %v2960_v8 = vadd.f32 %v2959_v27, %v2587_v29  ;;  %2788 = vrot.lane.b32.xlu1 %v2780_v37, %s3909_s25 }
 0x308   : > { %v3595_v11 = vpop.f32.mrf.mxu0  ;;  %v3603_v21 = vpop.f32.mrf.mxu1 }
 0x309   : > { %v2885_v3 = vmax.f32 %v2876_v49, 0.0  ;;  %v2973_v16 = vmax.f32 %v2960_v8, 0.0 }
 0x30a   : > { %v2880_v30 = vpop.f32.mrf.mxu0  ;;  %v2964_v39 = vpop.f32.mrf.mxu1 }
 0x30b   : > { %2888 = vst.msk [vmem:[%s4949_s29 + $0x18] sm:$0xff] %vm2691_vm2, %v2885_v3  ;;  %v2881_v56 = vadd.f32 %v2880_v30, %v4956_v2  ;;  %v2965_v35 = vadd.f32 %v2964_v39, %v2592_v18  ;;  %2979 = vrot.lane.b32.xlu1 %v2973_v16, %s3909_s25 }
 0x30c   : > { %v3606_v63 = vpop.f32.mrf.mxu1  ;;  %v3598_v57 = vpop.f32.mrf.mxu0 }
 0x30d   : > { %v2886_v28 = vmax.f32 %v2881_v56, 0.0  ;;  %v2974_v31 = vmax.f32 %v2965_v35, 0.0 }
 0x30e   : > { %v2969_v26 = vpop.f32.mrf.mxu1 }
 0x30f   : > { %2889 = vst.msk [vmem:[%s4949_s29 + $0x28] sm:$0xff] %vm2691_vm2, %v2886_v28  ;;  %v2970_v47 = vadd.f32 %v2969_v26, %v4956_v2  ;;  %2981 = vrot.lane.b32.xlu0 %v2974_v31, %s3909_s25 }
 0x310   : > { %v3609_v14 = vpop.f32.mrf.mxu1 }
 0x311   : > { %v2975_v20 = vmax.f32 %v2970_v47, 0.0 }
 0x313   : > { %2993 = vrot.lane.b32.xlu0 %v2991_v46, %s3909_s25  ;;  %2983 = vrot.lane.b32.xlu1 %v2975_v20, %s3909_s25 }
 0x371   : > { %v2785_v9 = vpop.permute.xlu1 %2784 }
 0x372   : > { %2794 = vst.msk [vmem:[%s4949_s29] sm:$0xff] %vm2793_vm3, %v2785_v9 }
 0x375   : > { %v2787_v22 = vpop.permute.xlu0 %2786 }
 0x376   : > { %2795 = vst.msk [vmem:[%s4949_s29 + $0x10] sm:$0xff] %vm2793_vm3, %v2787_v22 }
 0x379   : > { %v2789_v48 = vpop.permute.xlu1 %2788 }
 0x37a   : > { %2796 = vst.msk [vmem:[%s4949_s29 + $0x20] sm:$0xff] %vm2793_vm3, %v2789_v48 }
 0x37d   : > { %v2980_v1 = vpop.permute.xlu1 %2979 }
 0x37e   : > { %2988 = vst.msk [vmem:[%s4949_s29 + $0x8] sm:$0xff] %vm2793_vm3, %v2980_v1 }
 0x381   : > { %v2982_v24 = vpop.permute.xlu0 %2981 }
 0x382   : > { %2989 = vst.msk [vmem:[%s4949_s29 + $0x18] sm:$0xff] %vm2793_vm3, %v2982_v24 }
 0x385   : > { %v2994_v53 = vpop.permute.xlu0 %2993  ;;  %v2984_v6 = vpop.permute.xlu1 %2983 }
 0x386   : > { %2996 = vst.msk [vmem:[%s4949_s29 + $0x38] sm:$0xff] %vm2793_vm3, %v2994_v53  ;;  %2990 = vst.msk [vmem:[%s4949_s29 + $0x28] sm:$0xff] %vm2793_vm3, %v2984_v6 }
 0x387   : > { %3849 = shalt.err (!%p3846_p3)
}
 0x388   : > { %s3850_s23 = scalar_lea.hbm %s4998_s16, 1024  ;;  %s3854_s26 = scalar_lea.hbm %s5057_s9, 2048 }
 0x389   : > { %p3851_p4 = scmp.ne.s32.totalorder %s4998_s16, %s3850_s23  ;;  %p3855_p9 = scmp.lt.s32.totalorder %s4998_s16, %s5057_s9 }
 0x38a   : > { %p3856_p10 = scmp.lt.s32.totalorder %s3854_s26, %s3850_s23 }
 0x38b   : > { %p3852_p7 = pnand %p3851_p4, %p4001_p5 }
 0x38c   : > { %p3857_p11 = por %p3856_p10, %p3855_p9 }
 0x38d   : > { %p3853_p8 = pneg %p3852_p7 }
 0x38f   : > { %p3858_p12 = pnand %p3857_p11, %p3853_p8 }
 0x391   : > { %3861 = shalt.err (!%p3858_p12)
}
 0x392   : > { %s3911_s17 = smov 256   ;;  %s3912_s21 = smov 16  }
 0x393   : > { %3610 = dma.vmem_to_hbm [thread:$0]  (%p4001_p5), %s5000_s27, 1024, %s4998_s16, %s5008_s13, %s3911_s17, %s3911_s17, %s3912_s21  }
 0x394 PF: > { %p3616_p13 = scmp.ge.s32.totalorder %s3896_s12, 2  ;;  %s3026_s22 = sand.u32 1, %s3884_s30  }
 0x395   : > { %s3027_s24 = scalar_lea.sflag [#allocation3], %s3026_s22 }
 0x396   : > { %p3613_p0 = pnand %p3616_p13, %p4005_p6 }
 0x398   : > { %p3614_p1 = pneg %p3613_p0 }
 0x39a   : > { %3879 = dma.done.wait (%p3614_p1), %s3027_s24, 1024  }
 0x39b   : > { %3881 = vsyncadd (%p3614_p1), %s3027_s24, 4294966272  ;;  %p19_p2 = scmp.ge.s32.totalorder %s3988_s15, 4   ;;  %s5115_s30 = smov %s3888_s10 }
 0x39c   : > { %s5116_s10 = smov %s3892_s11  ;;  %s5117_s11 = smov %s3999_s18 }
 0x39d   : > { %s5118_s12 = smov %s3988_s15  ;;  %21 = sbr.rel (!%p19_p2) target bundleno = 3 (0x3), region = 94 }
 0x3a2   :  { %3032 = vsyncpa [#allocation3], 1 }
 0x3a3   :  { %3034 = vsyncpa [#allocation3 + $0x1], 1 }

</bundles_post_ra>
